<compile_context>
chip_gen: v7x
topology: tpu7x:2x2x1
jax: 0.10.0
libtpu: 0.0.40
codegen_flags: <defaults>
</compile_context>

<pallas_src>
import math
import jax
import jax.numpy as jnp
from jax.experimental import pallas as pl
from jax.experimental.pallas import tpu as pltpu

# ---------------- config constants ----------------
NUM_MODES       = 2                              # M
IN_FEAT_DIM     = 32                             # IF
FEAT_DIM        = 32                             # F
ATTN_MODE_DIM   = IN_FEAT_DIM // NUM_MODES       # D (per-mode head dim)
POS_CODE_WEIGHT = 0.5
LN_EPS          = 1e-12
INIT_STD        = 0.02                           # base_initializer_range
NEG_BIG         = -1e30                          # cross-batch attention mask


# ---------------- Pallas kernel ----------------
def cross_att_feat_trans_kernel(
    qf_ref, kf_ref, kft_ref, pos_ref,
    wq_ref, bq_ref, wkt_ref, bkt_ref, wv_ref, bv_ref,
    wmid_ref, bmid_ref, wout_ref, bout_ref, gamma_ref, beta_ref,
    o_ref):
  M = NUM_MODES

  qf  = qf_ref[...]     # (R1, IF)   R1 = B*U1
  kf  = kf_ref[...]     # (R2, IF)   R2 = B*U2
  kft = kft_ref[...]    # (IF, R2)
  pos = pos_ref[...]    # (R1, R2)   0.5*pos on diag blocks, -1e30 off-diagonal

  fusions = []
  # Static unroll over attention modes (M = 2).
  for m in range(M):
    # Q projection (attention scale already folded into wq/bq by the wrapper).
    qm = jnp.dot(qf, wq_ref[m], preferred_element_type=jnp.float32) + bq_ref[m]   # (R1, D)
    # K^T produced directly: (D, IF) @ (IF, R2) + bk^T -> (D, R2); no in-kernel transpose.
    kmT = jnp.dot(wkt_ref[m], kft, preferred_element_type=jnp.float32) + bkt_ref[m]
    # V projection (ExpandedFeatTrans.first_linear, this mode's slice).
    vm = jnp.dot(kf, wv_ref[m], preferred_element_type=jnp.float32) + bv_ref[m]   # (R2, F)

    # attention_scores = Q_m K_m^T / sqrt(D) + pos_code_weight*pos (+ batch mask).
    scores = jnp.dot(qm, kmT, preferred_element_type=jnp.float32) + pos

    # stable softmax over keys; att_dropout is identity in eval mode.
    scores = scores - jnp.max(scores, axis=-1, keepdims=True)
    e = jnp.exp(scores)
    probs = e * pl.reciprocal(jnp.sum(e, axis=-1, keepdims=True), approx=True)

    fusions.append(jnp.dot(probs, vm, preferred_element_type=jnp.float32))        # (R1, F)

  # --- fused FFN path across modes: one matmul/GELU/matmul/LN over (M*R1, F) ---
  fusion_all = jnp.concatenate(fusions, axis=0)                                   # (M*R1, F)

  # MMSharedMid: shared Linear(F, F) + GELU (dropout = identity).
  mid = jnp.dot(fusion_all, wmid_ref[...],
                preferred_element_type=jnp.float32) + bmid_ref[...]
  mid = jax.nn.gelu(mid, approximate=True)

  # MMSharedOutput: shared Linear(F, F) + residual + LayerNorm(F, eps=1e-12).
  out = jnp.dot(mid, wout_ref[...],
                preferred_element_type=jnp.float32) + bout_ref[...]
  out = out + fusion_all
  mu = jnp.mean(out, axis=-1, keepdims=True)
  var = jnp.mean((out - mu) ** 2, axis=-1, keepdims=True)
  ln = (out - mu) * jax.lax.rsqrt(var + LN_EPS)
  ln = ln * gamma_ref[...] + beta_ref[...]

  # pool_modes_feat == 'mean' over modes.
  r1 = o_ref.shape[0]
  acc = ln[:r1]
  for m in range(1, M):
    acc = acc + ln[m * r1:(m + 1) * r1]
  o_ref[...] = acc * (1.0 / M)


# ---------------- wrapper ----------------
def cross_att_feat_trans(query_feat, key_feat, pos_biases, p):
  B, U1, IF = query_feat.shape
  U2 = key_feat.shape[1]
  M, D, F = NUM_MODES, ATTN_MODE_DIM, FEAT_DIM
  R1, R2 = B * U1, B * U2
  scale = 1.0 / math.sqrt(D)

  # Flatten batch into rows.
  qf  = query_feat.reshape(R1, IF).astype(jnp.float32)
  kf  = key_feat.reshape(R2, IF).astype(jnp.float32)
  kft = kf.T                                                  # (IF, R2)

  # Block-diagonal positional bias + cross-batch mask, pos weight folded in.
  eye_b = jnp.eye(B, dtype=jnp.float32)
  pos_full = (jnp.kron(eye_b, POS_CODE_WEIGHT * pos_biases.astype(jnp.float32))
              + jnp.kron(1.0 - eye_b,
                         jnp.full((U1, U2), NEG_BIG, jnp.float32)))

  # Per-mode weight tiles; fold 1/sqrt(D) into the query projection.
  wq_all  = (p['wq'] * scale).reshape(IF, M, D).transpose(1, 0, 2)   # (M, IF, D)
  bq_all  = (p['bq'] * scale).reshape(1, M, D).transpose(1, 0, 2)    # (M, 1, D)
  wkt_all = p['wk'].reshape(IF, M, D).transpose(1, 2, 0)             # (M, D, IF)
  bkt_all = p['bk'].reshape(1, M, D).transpose(1, 2, 0)              # (M, D, 1)
  wv_all  = p['wv'].reshape(IF, M, F).transpose(1, 0, 2)             # (M, IF, F)
  bv_all  = p['bv'].reshape(1, M, F).transpose(1, 0, 2)              # (M, 1, F)

  args = (qf, kf, kft, pos_full,
          wq_all, bq_all, wkt_all, bkt_all, wv_all, bv_all,
          p['wmid'], p['bmid'], p['wout'], p['bout'], p['gamma'], p['beta'])

  def fspec(a):
    zeros = (0,) * a.ndim
    return pl.BlockSpec(a.shape, lambda i, _z=zeros: _z)

  out_flat = pl.pallas_call(
      cross_att_feat_trans_kernel,
      out_shape=jax.ShapeDtypeStruct((R1, F), jnp.float32),
      grid=(1,),
      in_specs=[fspec(a) for a in args],
      out_specs=pl.BlockSpec((R1, F), lambda i: (0, 0)),
      compiler_params=pltpu.CompilerParams(
          dimension_semantics=("arbitrary",)),
  )(*args)

  return out_flat.reshape(B, U1, F)


# ---------------- pure-JAX reference (mirrors the PyTorch forward) ----------------
def reference(query_feat, key_feat, pos_biases, p):
  B, U1, IF = query_feat.shape
  U2 = key_feat.shape[1]
  M, D, F = NUM_MODES, ATTN_MODE_DIM, FEAT_DIM

  q = query_feat @ p['wq'] + p['bq']
  k = key_feat @ p['wk'] + p['bk']
  q = q.reshape(B, U1, M, D).transpose(0, 2, 1, 3)
  k = k.reshape(B, U2, M, D).transpose(0, 2, 1, 3)
  scores = jnp.einsum('bmqd,bmkd->bmqk', q, k) / math.sqrt(D)
  scores = scores + POS_CODE_WEIGHT * pos_biases[None, None]
  probs = jax.nn.softmax(scores, axis=-1)

  v = key_feat @ p['wv'] + p['bv']                        # (B, U2, M*F)
  v4 = v.reshape(B, U2, M, F).transpose(0, 2, 1, 3)       # (B, M, U2, F)
  fusion = jnp.einsum('bmqk,bmkf->bmqf', probs, v4)       # (B, M, U1, F)

  mid = jax.nn.gelu(fusion @ p['wmid'] + p['bmid'], approximate=True)
  out = mid @ p['wout'] + p['bout'] + fusion
  mu = out.mean(-1, keepdims=True)
  var = ((out - mu) ** 2).mean(-1, keepdims=True)
  ln = (out - mu) / jnp.sqrt(var + LN_EPS) * p['gamma'] + p['beta']
  return ln.mean(axis=1)                                  # pool over modes


# ---------------- parameter init (deterministic, synthetic) ----------------
def init_params(key):
  ks = jax.random.split(key, 12)
  IF, M, F = IN_FEAT_DIM, NUM_MODES, FEAT_DIM
  n = lambda k, s, std=INIT_STD: (std * jax.random.normal(k, s)).astype(jnp.float32)
  return {
      'wq':   n(ks[0], (IF, IF)),        'bq':   n(ks[1], (1, IF)),
      'wk':   n(ks[2], (IF, IF)),        'bk':   n(ks[3], (1, IF)),
      'wv':   n(ks[4], (IF, M * F)),     'bv':   n(ks[5], (1, M * F)),
      'wmid': n(ks[6], (F, F)),          'bmid': n(ks[7], (1, F)),
      'wout': n(ks[8], (F, F)),          'bout': n(ks[9], (1, F)),
      'gamma': (1.0 + 0.1 * jax.random.normal(ks[10], (1, F))).astype(jnp.float32),
      'beta':  (0.1 * jax.random.normal(ks[11], (1, F))).astype(jnp.float32),
  }


if __name__ == "__main__":
  key = jax.random.PRNGKey(0)
  k_p, k_q, k_k, k_pos = jax.random.split(key, 4)

  B, U1, U2 = 2, 16, 16
  params = init_params(k_p)
  query_feat = jax.random.normal(k_q, (B, U1, IN_FEAT_DIM), jnp.float32)
  key_feat   = jax.random.normal(k_k, (B, U2, IN_FEAT_DIM), jnp.float32)
  pos_biases = 0.1 * jax.random.normal(k_pos, (U1, U2), jnp.float32)

  out = cross_att_feat_trans(query_feat, key_feat, pos_biases, params)
  out = jax.block_until_ready(out)

  ref = reference(query_feat, key_feat, pos_biases, params)
  assert out.shape == (B, U1, FEAT_DIM)
  assert jnp.allclose(out, ref, atol=2e-3, rtol=2e-3), "kernel/reference mismatch"

  # TODO(synk): att_dropout / hidden dropout / DropPath are eval-mode identities here
  # (no RNG inside the kernel).  bf16 weight/input casting (v6e/v7x suggestion) was
  # left out to preserve f32 parity with the reference at this tiny size.
  print("KERNEL_OK")
</pallas_src>

<mosaic_0001>
module attributes {stable_mosaic.version = 11 : i64} {
  func.func @cross_att_feat_trans_kernel(%arg0: i32, %arg1: memref<32x32xf32, #tpu.memory_space<vmem>>, %arg2: memref<32x32xf32, #tpu.memory_space<vmem>>, %arg3: memref<32x32xf32, #tpu.memory_space<vmem>>, %arg4: memref<32x32xf32, #tpu.memory_space<vmem>>, %arg5: memref<2x32x16xf32, #tpu.memory_space<vmem>>, %arg6: memref<2x1x16xf32, #tpu.memory_space<vmem>>, %arg7: memref<2x16x32xf32, #tpu.memory_space<vmem>>, %arg8: memref<2x16x1xf32, #tpu.memory_space<vmem>>, %arg9: memref<2x32x32xf32, #tpu.memory_space<vmem>>, %arg10: memref<2x1x32xf32, #tpu.memory_space<vmem>>, %arg11: memref<32x32xf32, #tpu.memory_space<vmem>>, %arg12: memref<1x32xf32, #tpu.memory_space<vmem>>, %arg13: memref<32x32xf32, #tpu.memory_space<vmem>>, %arg14: memref<1x32xf32, #tpu.memory_space<vmem>>, %arg15: memref<1x32xf32, #tpu.memory_space<vmem>>, %arg16: memref<1x32xf32, #tpu.memory_space<vmem>>, %arg17: memref<32x32xf32, #tpu.memory_space<vmem>>) attributes {dimension_semantics = [#tpu.dimension_semantics<arbitrary>], iteration_bounds = array<i64: 1>, scalar_prefetch = 0 : i64, scratch_operands = 0 : i64, tpu.core_type = #tpu.core_type<tc>, window_params = [{pipeline_mode = #tpu.pipeline_mode<synchronous>, transform_indices = @transform_0, window_bounds = array<i64: 32, 32>}, {pipeline_mode = #tpu.pipeline_mode<synchronous>, transform_indices = @transform_1, window_bounds = array<i64: 32, 32>}, {pipeline_mode = #tpu.pipeline_mode<synchronous>, transform_indices = @transform_2, window_bounds = array<i64: 32, 32>}, {pipeline_mode = #tpu.pipeline_mode<synchronous>, transform_indices = @transform_3, window_bounds = array<i64: 32, 32>}, {pipeline_mode = #tpu.pipeline_mode<synchronous>, transform_indices = @transform_4, window_bounds = array<i64: 2, 32, 16>}, {pipeline_mode = #tpu.pipeline_mode<synchronous>, transform_indices = @transform_5, window_bounds = array<i64: 2, 1, 16>}, {pipeline_mode = #tpu.pipeline_mode<synchronous>, transform_indices = @transform_6, window_bounds = array<i64: 2, 16, 32>}, {pipeline_mode = #tpu.pipeline_mode<synchronous>, transform_indices = @transform_7, window_bounds = array<i64: 2, 16, 1>}, {pipeline_mode = #tpu.pipeline_mode<synchronous>, transform_indices = @transform_8, window_bounds = array<i64: 2, 32, 32>}, {pipeline_mode = #tpu.pipeline_mode<synchronous>, transform_indices = @transform_9, window_bounds = array<i64: 2, 1, 32>}, {pipeline_mode = #tpu.pipeline_mode<synchronous>, transform_indices = @transform_10, window_bounds = array<i64: 32, 32>}, {pipeline_mode = #tpu.pipeline_mode<synchronous>, transform_indices = @transform_11, window_bounds = array<i64: 1, 32>}, {pipeline_mode = #tpu.pipeline_mode<synchronous>, transform_indices = @transform_12, window_bounds = array<i64: 32, 32>}, {pipeline_mode = #tpu.pipeline_mode<synchronous>, transform_indices = @transform_13, window_bounds = array<i64: 1, 32>}, {pipeline_mode = #tpu.pipeline_mode<synchronous>, transform_indices = @transform_14, window_bounds = array<i64: 1, 32>}, {pipeline_mode = #tpu.pipeline_mode<synchronous>, transform_indices = @transform_15, window_bounds = array<i64: 1, 32>}, {pipeline_mode = #tpu.pipeline_mode<synchronous>, transform_indices = @transform_16, window_bounds = array<i64: 32, 32>}]} {
    %c0 = arith.constant 0 : index
    %c0_0 = arith.constant 0 : index
    %0 = vector.load %arg1[%c0, %c0_0] : memref<32x32xf32, #tpu.memory_space<vmem>>, vector<32x32xf32>
    %c0_1 = arith.constant 0 : index
    %c0_2 = arith.constant 0 : index
    %1 = vector.load %arg2[%c0_1, %c0_2] : memref<32x32xf32, #tpu.memory_space<vmem>>, vector<32x32xf32>
    %c0_3 = arith.constant 0 : index
    %c0_4 = arith.constant 0 : index
    %2 = vector.load %arg3[%c0_3, %c0_4] : memref<32x32xf32, #tpu.memory_space<vmem>>, vector<32x32xf32>
    %c0_5 = arith.constant 0 : index
    %c0_6 = arith.constant 0 : index
    %3 = vector.load %arg4[%c0_5, %c0_6] : memref<32x32xf32, #tpu.memory_space<vmem>>, vector<32x32xf32>
    %c0_7 = arith.constant 0 : index
    %c0_8 = arith.constant 0 : index
    %c0_9 = arith.constant 0 : index
    %4 = vector.load %arg5[%c0_7, %c0_8, %c0_9] : memref<2x32x16xf32, #tpu.memory_space<vmem>>, vector<1x32x16xf32>
    %5 = vector.shape_cast %4 : vector<1x32x16xf32> to vector<32x16xf32>
    %cst = arith.constant dense<0.000000e+00> : vector<32x16xf32>
    %6 = tpu.matmul %0, %5, %cst {dimension_numbers = #tpu.dot_dimension_numbers<[1], [0], [0], [1], [0, 0, 1, 1], [], []>} : vector<32x32xf32>, vector<32x16xf32>, vector<32x16xf32> -> vector<32x16xf32>
    %c0_10 = arith.constant 0 : index
    %c0_11 = arith.constant 0 : index
    %c0_12 = arith.constant 0 : index
    %7 = vector.load %arg6[%c0_10, %c0_11, %c0_12] : memref<2x1x16xf32, #tpu.memory_space<vmem>>, vector<1x1x16xf32>
    %8 = vector.shape_cast %7 : vector<1x1x16xf32> to vector<1x16xf32>
    %9 = vector.broadcast %8 : vector<1x16xf32> to vector<32x16xf32>
    %10 = arith.addf %6, %9 : vector<32x16xf32>
    %c0_13 = arith.constant 0 : index
    %c0_14 = arith.constant 0 : index
    %c0_15 = arith.constant 0 : index
    %11 = vector.load %arg7[%c0_13, %c0_14, %c0_15] : memref<2x16x32xf32, #tpu.memory_space<vmem>>, vector<1x16x32xf32>
    %12 = vector.shape_cast %11 : vector<1x16x32xf32> to vector<16x32xf32>
    %cst_16 = arith.constant dense<0.000000e+00> : vector<16x32xf32>
    %13 = tpu.matmul %12, %2, %cst_16 {dimension_numbers = #tpu.dot_dimension_numbers<[1], [0], [0], [1], [0, 0, 1, 1], [], []>} : vector<16x32xf32>, vector<32x32xf32>, vector<16x32xf32> -> vector<16x32xf32>
    %c0_17 = arith.constant 0 : index
    %c0_18 = arith.constant 0 : index
    %c0_19 = arith.constant 0 : index
    %14 = vector.load %arg8[%c0_17, %c0_18, %c0_19] : memref<2x16x1xf32, #tpu.memory_space<vmem>>, vector<1x16x1xf32>
    %15 = vector.shape_cast %14 : vector<1x16x1xf32> to vector<16x1xf32>
    %16 = vector.broadcast %15 : vector<16x1xf32> to vector<16x32xf32>
    %17 = arith.addf %13, %16 : vector<16x32xf32>
    %c0_20 = arith.constant 0 : index
    %c0_21 = arith.constant 0 : index
    %c0_22 = arith.constant 0 : index
    %18 = vector.load %arg9[%c0_20, %c0_21, %c0_22] : memref<2x32x32xf32, #tpu.memory_space<vmem>>, vector<1x32x32xf32>
    %19 = vector.shape_cast %18 : vector<1x32x32xf32> to vector<32x32xf32>
    %cst_23 = arith.constant dense<0.000000e+00> : vector<32x32xf32>
    %20 = tpu.matmul %1, %19, %cst_23 {dimension_numbers = #tpu.dot_dimension_numbers<[1], [0], [0], [1], [0, 0, 1, 1], [], []>} : vector<32x32xf32>, vector<32x32xf32>, vector<32x32xf32> -> vector<32x32xf32>
    %c0_24 = arith.constant 0 : index
    %c0_25 = arith.constant 0 : index
    %c0_26 = arith.constant 0 : index
    %21 = vector.load %arg10[%c0_24, %c0_25, %c0_26] : memref<2x1x32xf32, #tpu.memory_space<vmem>>, vector<1x1x32xf32>
    %22 = vector.shape_cast %21 : vector<1x1x32xf32> to vector<1x32xf32>
    %23 = vector.broadcast %22 : vector<1x32xf32> to vector<32x32xf32>
    %24 = arith.addf %20, %23 : vector<32x32xf32>
    %cst_27 = arith.constant dense<0.000000e+00> : vector<32x32xf32>
    %25 = tpu.matmul %10, %17, %cst_27 {dimension_numbers = #tpu.dot_dimension_numbers<[1], [0], [0], [1], [0, 0, 1, 1], [], []>} : vector<32x16xf32>, vector<16x32xf32>, vector<32x32xf32> -> vector<32x32xf32>
    %26 = arith.addf %25, %3 : vector<32x32xf32>
    %cst_28 = arith.constant dense<0xFF800000> : vector<32xf32>
    %27 = vector.multi_reduction <maximumf>, %26, %cst_28 [1] : vector<32x32xf32> to vector<32xf32>
    %28 = vector.shape_cast %27 : vector<32xf32> to vector<32x1xf32>
    %29 = vector.broadcast %28 : vector<32x1xf32> to vector<32x32xf32>
    %30 = arith.subf %26, %29 : vector<32x32xf32>
    %31 = math.exp %30 : vector<32x32xf32>
    %cst_29 = arith.constant dense<0.000000e+00> : vector<32xf32>
    %32 = vector.multi_reduction <add>, %31, %cst_29 [1] : vector<32x32xf32> to vector<32xf32>
    %33 = vector.shape_cast %32 : vector<32xf32> to vector<32x1xf32>
    %34 = tpu.reciprocal %33 {approx = true} : vector<32x1xf32> -> vector<32x1xf32>
    %35 = vector.broadcast %34 : vector<32x1xf32> to vector<32x32xf32>
    %36 = arith.mulf %31, %35 : vector<32x32xf32>
    %cst_30 = arith.constant dense<0.000000e+00> : vector<32x32xf32>
    %37 = tpu.matmul %36, %24, %cst_30 {dimension_numbers = #tpu.dot_dimension_numbers<[1], [0], [0], [1], [0, 0, 1, 1], [], []>} : vector<32x32xf32>, vector<32x32xf32>, vector<32x32xf32> -> vector<32x32xf32>
    %c1 = arith.constant 1 : index
    %c0_31 = arith.constant 0 : index
    %c0_32 = arith.constant 0 : index
    %38 = vector.load %arg5[%c1, %c0_31, %c0_32] : memref<2x32x16xf32, #tpu.memory_space<vmem>>, vector<1x32x16xf32>
    %39 = vector.shape_cast %38 : vector<1x32x16xf32> to vector<32x16xf32>
    %cst_33 = arith.constant dense<0.000000e+00> : vector<32x16xf32>
    %40 = tpu.matmul %0, %39, %cst_33 {dimension_numbers = #tpu.dot_dimension_numbers<[1], [0], [0], [1], [0, 0, 1, 1], [], []>} : vector<32x32xf32>, vector<32x16xf32>, vector<32x16xf32> -> vector<32x16xf32>
    %c1_34 = arith.constant 1 : index
    %c0_35 = arith.constant 0 : index
    %c0_36 = arith.constant 0 : index
    %41 = vector.load %arg6[%c1_34, %c0_35, %c0_36] : memref<2x1x16xf32, #tpu.memory_space<vmem>>, vector<1x1x16xf32>
    %42 = vector.shape_cast %41 : vector<1x1x16xf32> to vector<1x16xf32>
    %43 = vector.broadcast %42 : vector<1x16xf32> to vector<32x16xf32>
    %44 = arith.addf %40, %43 : vector<32x16xf32>
    %c1_37 = arith.constant 1 : index
    %c0_38 = arith.constant 0 : index
    %c0_39 = arith.constant 0 : index
    %45 = vector.load %arg7[%c1_37, %c0_38, %c0_39] : memref<2x16x32xf32, #tpu.memory_space<vmem>>, vector<1x16x32xf32>
    %46 = vector.shape_cast %45 : vector<1x16x32xf32> to vector<16x32xf32>
    %cst_40 = arith.constant dense<0.000000e+00> : vector<16x32xf32>
    %47 = tpu.matmul %46, %2, %cst_40 {dimension_numbers = #tpu.dot_dimension_numbers<[1], [0], [0], [1], [0, 0, 1, 1], [], []>} : vector<16x32xf32>, vector<32x32xf32>, vector<16x32xf32> -> vector<16x32xf32>
    %c1_41 = arith.constant 1 : index
    %c0_42 = arith.constant 0 : index
    %c0_43 = arith.constant 0 : index
    %48 = vector.load %arg8[%c1_41, %c0_42, %c0_43] : memref<2x16x1xf32, #tpu.memory_space<vmem>>, vector<1x16x1xf32>
    %49 = vector.shape_cast %48 : vector<1x16x1xf32> to vector<16x1xf32>
    %50 = vector.broadcast %49 : vector<16x1xf32> to vector<16x32xf32>
    %51 = arith.addf %47, %50 : vector<16x32xf32>
    %c1_44 = arith.constant 1 : index
    %c0_45 = arith.constant 0 : index
    %c0_46 = arith.constant 0 : index
    %52 = vector.load %arg9[%c1_44, %c0_45, %c0_46] : memref<2x32x32xf32, #tpu.memory_space<vmem>>, vector<1x32x32xf32>
    %53 = vector.shape_cast %52 : vector<1x32x32xf32> to vector<32x32xf32>
    %cst_47 = arith.constant dense<0.000000e+00> : vector<32x32xf32>
    %54 = tpu.matmul %1, %53, %cst_47 {dimension_numbers = #tpu.dot_dimension_numbers<[1], [0], [0], [1], [0, 0, 1, 1], [], []>} : vector<32x32xf32>, vector<32x32xf32>, vector<32x32xf32> -> vector<32x32xf32>
    %c1_48 = arith.constant 1 : index
    %c0_49 = arith.constant 0 : index
    %c0_50 = arith.constant 0 : index
    %55 = vector.load %arg10[%c1_48, %c0_49, %c0_50] : memref<2x1x32xf32, #tpu.memory_space<vmem>>, vector<1x1x32xf32>
    %56 = vector.shape_cast %55 : vector<1x1x32xf32> to vector<1x32xf32>
    %57 = vector.broadcast %56 : vector<1x32xf32> to vector<32x32xf32>
    %58 = arith.addf %54, %57 : vector<32x32xf32>
    %cst_51 = arith.constant dense<0.000000e+00> : vector<32x32xf32>
    %59 = tpu.matmul %44, %51, %cst_51 {dimension_numbers = #tpu.dot_dimension_numbers<[1], [0], [0], [1], [0, 0, 1, 1], [], []>} : vector<32x16xf32>, vector<16x32xf32>, vector<32x32xf32> -> vector<32x32xf32>
    %60 = arith.addf %59, %3 : vector<32x32xf32>
    %cst_52 = arith.constant dense<0xFF800000> : vector<32xf32>
    %61 = vector.multi_reduction <maximumf>, %60, %cst_52 [1] : vector<32x32xf32> to vector<32xf32>
    %62 = vector.shape_cast %61 : vector<32xf32> to vector<32x1xf32>
    %63 = vector.broadcast %62 : vector<32x1xf32> to vector<32x32xf32>
    %64 = arith.subf %60, %63 : vector<32x32xf32>
    %65 = math.exp %64 : vector<32x32xf32>
    %cst_53 = arith.constant dense<0.000000e+00> : vector<32xf32>
    %66 = vector.multi_reduction <add>, %65, %cst_53 [1] : vector<32x32xf32> to vector<32xf32>
    %67 = vector.shape_cast %66 : vector<32xf32> to vector<32x1xf32>
    %68 = tpu.reciprocal %67 {approx = true} : vector<32x1xf32> -> vector<32x1xf32>
    %69 = vector.broadcast %68 : vector<32x1xf32> to vector<32x32xf32>
    %70 = arith.mulf %65, %69 : vector<32x32xf32>
    %cst_54 = arith.constant dense<0.000000e+00> : vector<32x32xf32>
    %71 = tpu.matmul %70, %58, %cst_54 {dimension_numbers = #tpu.dot_dimension_numbers<[1], [0], [0], [1], [0, 0, 1, 1], [], []>} : vector<32x32xf32>, vector<32x32xf32>, vector<32x32xf32> -> vector<32x32xf32>
    %72 = tpu.concatenate %37, %71 in 0 : vector<32x32xf32>, vector<32x32xf32> -> vector<64x32xf32>
    %c0_55 = arith.constant 0 : index
    %c0_56 = arith.constant 0 : index
    %73 = vector.load %arg11[%c0_55, %c0_56] : memref<32x32xf32, #tpu.memory_space<vmem>>, vector<32x32xf32>
    %cst_57 = arith.constant dense<0.000000e+00> : vector<64x32xf32>
    %74 = tpu.matmul %72, %73, %cst_57 {dimension_numbers = #tpu.dot_dimension_numbers<[1], [0], [0], [1], [0, 0, 1, 1], [], []>} : vector<64x32xf32>, vector<32x32xf32>, vector<64x32xf32> -> vector<64x32xf32>
    %c0_58 = arith.constant 0 : index
    %c0_59 = arith.constant 0 : index
    %75 = vector.load %arg12[%c0_58, %c0_59] : memref<1x32xf32, #tpu.memory_space<vmem>>, vector<1x32xf32>
    %76 = vector.broadcast %75 : vector<1x32xf32> to vector<64x32xf32>
    %77 = arith.addf %74, %76 : vector<64x32xf32>
    %78 = arith.mulf %77, %77 : vector<64x32xf32>
    %79 = arith.mulf %77, %78 : vector<64x32xf32>
    %cst_60 = arith.constant 4.471500e-02 : f32
    %80 = vector.broadcast %cst_60 : f32 to vector<64x32xf32>
    %81 = arith.mulf %80, %79 : vector<64x32xf32>
    %82 = arith.addf %77, %81 : vector<64x32xf32>
    %cst_61 = arith.constant 0.797884583 : f32
    %83 = vector.broadcast %cst_61 : f32 to vector<64x32xf32>
    %84 = arith.mulf %83, %82 : vector<64x32xf32>
    %85 = math.tanh %84 : vector<64x32xf32>
    %cst_62 = arith.constant 1.000000e+00 : f32
    %86 = vector.broadcast %cst_62 : f32 to vector<64x32xf32>
    %87 = arith.addf %86, %85 : vector<64x32xf32>
    %cst_63 = arith.constant 5.000000e-01 : f32
    %88 = vector.broadcast %cst_63 : f32 to vector<64x32xf32>
    %89 = arith.mulf %88, %87 : vector<64x32xf32>
    %90 = arith.mulf %77, %89 : vector<64x32xf32>
    %c0_64 = arith.constant 0 : index
    %c0_65 = arith.constant 0 : index
    %91 = vector.load %arg13[%c0_64, %c0_65] : memref<32x32xf32, #tpu.memory_space<vmem>>, vector<32x32xf32>
    %cst_66 = arith.constant dense<0.000000e+00> : vector<64x32xf32>
    %92 = tpu.matmul %90, %91, %cst_66 {dimension_numbers = #tpu.dot_dimension_numbers<[1], [0], [0], [1], [0, 0, 1, 1], [], []>} : vector<64x32xf32>, vector<32x32xf32>, vector<64x32xf32> -> vector<64x32xf32>
    %c0_67 = arith.constant 0 : index
    %c0_68 = arith.constant 0 : index
    %93 = vector.load %arg14[%c0_67, %c0_68] : memref<1x32xf32, #tpu.memory_space<vmem>>, vector<1x32xf32>
    %94 = vector.broadcast %93 : vector<1x32xf32> to vector<64x32xf32>
    %95 = arith.addf %92, %94 : vector<64x32xf32>
    %96 = arith.addf %95, %72 : vector<64x32xf32>
    %cst_69 = arith.constant dense<0.000000e+00> : vector<64xf32>
    %97 = vector.multi_reduction <add>, %96, %cst_69 [1] : vector<64x32xf32> to vector<64xf32>
    %98 = vector.shape_cast %97 : vector<64xf32> to vector<64x1xf32>
    %cst_70 = arith.constant 3.200000e+01 : f32
    %99 = vector.broadcast %cst_70 : f32 to vector<64x1xf32>
    %100 = arith.divf %98, %99 : vector<64x1xf32>
    %101 = vector.broadcast %100 : vector<64x1xf32> to vector<64x32xf32>
    %102 = arith.subf %96, %101 : vector<64x32xf32>
    %103 = arith.mulf %102, %102 : vector<64x32xf32>
    %cst_71 = arith.constant dense<0.000000e+00> : vector<64xf32>
    %104 = vector.multi_reduction <add>, %103, %cst_71 [1] : vector<64x32xf32> to vector<64xf32>
    %105 = vector.shape_cast %104 : vector<64xf32> to vector<64x1xf32>
    %cst_72 = arith.constant 3.200000e+01 : f32
    %106 = vector.broadcast %cst_72 : f32 to vector<64x1xf32>
    %107 = arith.divf %105, %106 : vector<64x1xf32>
    %108 = vector.broadcast %100 : vector<64x1xf32> to vector<64x32xf32>
    %109 = arith.subf %96, %108 : vector<64x32xf32>
    %cst_73 = arith.constant 9.99999996E-13 : f32
    %110 = vector.broadcast %cst_73 : f32 to vector<64x1xf32>
    %111 = arith.addf %107, %110 : vector<64x1xf32>
    %112 = math.rsqrt %111 : vector<64x1xf32>
    %113 = vector.broadcast %112 : vector<64x1xf32> to vector<64x32xf32>
    %114 = arith.mulf %109, %113 : vector<64x32xf32>
    %c0_74 = arith.constant 0 : index
    %c0_75 = arith.constant 0 : index
    %115 = vector.load %arg15[%c0_74, %c0_75] : memref<1x32xf32, #tpu.memory_space<vmem>>, vector<1x32xf32>
    %116 = vector.broadcast %115 : vector<1x32xf32> to vector<64x32xf32>
    %117 = arith.mulf %114, %116 : vector<64x32xf32>
    %c0_76 = arith.constant 0 : index
    %c0_77 = arith.constant 0 : index
    %118 = vector.load %arg16[%c0_76, %c0_77] : memref<1x32xf32, #tpu.memory_space<vmem>>, vector<1x32xf32>
    %119 = vector.broadcast %118 : vector<1x32xf32> to vector<64x32xf32>
    %120 = arith.addf %117, %119 : vector<64x32xf32>
    %121 = vector.extract_strided_slice %120 {offsets = [0, 0], sizes = [32, 32], strides = [1, 1]} : vector<64x32xf32> to vector<32x32xf32>
    %122 = vector.extract_strided_slice %120 {offsets = [32, 0], sizes = [32, 32], strides = [1, 1]} : vector<64x32xf32> to vector<32x32xf32>
    %123 = arith.addf %121, %122 : vector<32x32xf32>
    %cst_78 = arith.constant 5.000000e-01 : f32
    %124 = vector.broadcast %cst_78 : f32 to vector<32x32xf32>
    %125 = arith.mulf %123, %124 : vector<32x32xf32>
    %c0_79 = arith.constant 0 : index
    %c0_80 = arith.constant 0 : index
    %126 = vector.load %arg17[%c0_79, %c0_80] : memref<32x32xf32, #tpu.memory_space<vmem>>, vector<32x32xf32>
    tpu.vector_store %arg17[%c0_79, %c0_80], %125 {strides = array<i32>} : memref<32x32xf32, #tpu.memory_space<vmem>>, vector<32x32xf32>,
    return
  }
  func.func @transform_0(%arg0: i32) -> (i32, i32) {
    %c0_i32 = arith.constant 0 : i32
    %c0_i32_0 = arith.constant 0 : i32
    %c0_i32_1 = arith.constant 0 : i32
    return %c0_i32, %c0_i32_0 : i32, i32
  }
  func.func @transform_1(%arg0: i32) -> (i32, i32) {
    %c0_i32 = arith.constant 0 : i32
    %c0_i32_0 = arith.constant 0 : i32
    %c0_i32_1 = arith.constant 0 : i32
    return %c0_i32, %c0_i32_0 : i32, i32
  }
  func.func @transform_2(%arg0: i32) -> (i32, i32) {
    %c0_i32 = arith.constant 0 : i32
    %c0_i32_0 = arith.constant 0 : i32
    %c0_i32_1 = arith.constant 0 : i32
    return %c0_i32, %c0_i32_0 : i32, i32
  }
  func.func @transform_3(%arg0: i32) -> (i32, i32) {
    %c0_i32 = arith.constant 0 : i32
    %c0_i32_0 = arith.constant 0 : i32
    %c0_i32_1 = arith.constant 0 : i32
    return %c0_i32, %c0_i32_0 : i32, i32
  }
  func.func @transform_4(%arg0: i32) -> (i32, i32, i32) {
    %c0_i32 = arith.constant 0 : i32
    %c0_i32_0 = arith.constant 0 : i32
    %c0_i32_1 = arith.constant 0 : i32
    %c0_i32_2 = arith.constant 0 : i32
    return %c0_i32, %c0_i32_0, %c0_i32_1 : i32, i32, i32
  }
  func.func @transform_5(%arg0: i32) -> (i32, i32, i32) {
    %c0_i32 = arith.constant 0 : i32
    %c0_i32_0 = arith.constant 0 : i32
    %c0_i32_1 = arith.constant 0 : i32
    %c0_i32_2 = arith.constant 0 : i32
    return %c0_i32, %c0_i32_0, %c0_i32_1 : i32, i32, i32
  }
  func.func @transform_6(%arg0: i32) -> (i32, i32, i32) {
    %c0_i32 = arith.constant 0 : i32
    %c0_i32_0 = arith.constant 0 : i32
    %c0_i32_1 = arith.constant 0 : i32
    %c0_i32_2 = arith.constant 0 : i32
    return %c0_i32, %c0_i32_0, %c0_i32_1 : i32, i32, i32
  }
  func.func @transform_7(%arg0: i32) -> (i32, i32, i32) {
    %c0_i32 = arith.constant 0 : i32
    %c0_i32_0 = arith.constant 0 : i32
    %c0_i32_1 = arith.constant 0 : i32
    %c0_i32_2 = arith.constant 0 : i32
    return %c0_i32, %c0_i32_0, %c0_i32_1 : i32, i32, i32
  }
  func.func @transform_8(%arg0: i32) -> (i32, i32, i32) {
    %c0_i32 = arith.constant 0 : i32
    %c0_i32_0 = arith.constant 0 : i32
    %c0_i32_1 = arith.constant 0 : i32
    %c0_i32_2 = arith.constant 0 : i32
    return %c0_i32, %c0_i32_0, %c0_i32_1 : i32, i32, i32
  }
  func.func @transform_9(%arg0: i32) -> (i32, i32, i32) {
    %c0_i32 = arith.constant 0 : i32
    %c0_i32_0 = arith.constant 0 : i32
    %c0_i32_1 = arith.constant 0 : i32
    %c0_i32_2 = arith.constant 0 : i32
    return %c0_i32, %c0_i32_0, %c0_i32_1 : i32, i32, i32
  }
  func.func @transform_10(%arg0: i32) -> (i32, i32) {
    %c0_i32 = arith.constant 0 : i32
    %c0_i32_0 = arith.constant 0 : i32
    %c0_i32_1 = arith.constant 0 : i32
    return %c0_i32, %c0_i32_0 : i32, i32
  }
  func.func @transform_11(%arg0: i32) -> (i32, i32) {
    %c0_i32 = arith.constant 0 : i32
    %c0_i32_0 = arith.constant 0 : i32
    %c0_i32_1 = arith.constant 0 : i32
    return %c0_i32, %c0_i32_0 : i32, i32
  }
  func.func @transform_12(%arg0: i32) -> (i32, i32) {
    %c0_i32 = arith.constant 0 : i32
    %c0_i32_0 = arith.constant 0 : i32
    %c0_i32_1 = arith.constant 0 : i32
    return %c0_i32, %c0_i32_0 : i32, i32
  }
  func.func @transform_13(%arg0: i32) -> (i32, i32) {
    %c0_i32 = arith.constant 0 : i32
    %c0_i32_0 = arith.constant 0 : i32
    %c0_i32_1 = arith.constant 0 : i32
    return %c0_i32, %c0_i32_0 : i32, i32
  }
  func.func @transform_14(%arg0: i32) -> (i32, i32) {
    %c0_i32 = arith.constant 0 : i32
    %c0_i32_0 = arith.constant 0 : i32
    %c0_i32_1 = arith.constant 0 : i32
    return %c0_i32, %c0_i32_0 : i32, i32
  }
  func.func @transform_15(%arg0: i32) -> (i32, i32) {
    %c0_i32 = arith.constant 0 : i32
    %c0_i32_0 = arith.constant 0 : i32
    %c0_i32_1 = arith.constant 0 : i32
    return %c0_i32, %c0_i32_0 : i32, i32
  }
  func.func @transform_16(%arg0: i32) -> (i32, i32) {
    %c0_i32 = arith.constant 0 : i32
    %c0_i32_0 = arith.constant 0 : i32
    %c0_i32_1 = arith.constant 0 : i32
    return %c0_i32, %c0_i32_0 : i32, i32
  }
}

</mosaic_0001>

<bundles_post_ra>
// kernel: tpu_custom_call.1
= control target key start
LH: loop header
LB: loop body
LE: loop exit
PB: predicated region body
PF: predicated region fallthrough
CT: control target
= control target key end

     0   :  { %s3040_s0 = inlined_call_operand.vmem [shape: f32[32,32], index: 0, kind: input, shape index: {}]   ;;  %s3041_s1 = inlined_call_operand.hbm [shape: f32[32,32], index: 1, kind: input, shape index: {}]   ;;  %s3042_s2 = inlined_call_operand.hbm [shape: f32[32,32], index: 2, kind: input, shape index: {}]   ;;  %s3043_s3 = inlined_call_operand.hbm [shape: f32[32,32], index: 3, kind: input, shape index: {}]   ;;  %s3044_s4 = inlined_call_operand.vmem [shape: f32[2,32,16], index: 4, kind: input, shape index: {}]   ;;  %s3045_s5 = inlined_call_operand.hbm [shape: f32[2,1,16], index: 5, kind: input, shape index: {}]   ;;  %s3046_s6 = inlined_call_operand.hbm [shape: f32[2,16,32], index: 6, kind: input, shape index: {}]   ;;  %s3047_s7 = inlined_call_operand.vmem [shape: f32[2,16,1], index: 7, kind: input, shape index: {}]   ;;  %s3048_s8 = inlined_call_operand.vmem [shape: f32[2,32,32], index: 8, kind: input, shape index: {}]   ;;  %s3049_s9 = inlined_call_operand.vmem [shape: f32[2,1,32], index: 9, kind: input, shape index: {}]   ;;  %s3050_s10 = inlined_call_operand.vmem [shape: f32[32,32], index: 10, kind: input, shape index: {}]   ;;  %s3051_s11 = inlined_call_operand.vmem [shape: f32[1,32], index: 11, kind: input, shape index: {}]   ;;  %s3052_s12 = inlined_call_operand.hbm [shape: f32[32,32], index: 12, kind: input, shape index: {}]   ;;  %s3053_s13 = inlined_call_operand.vmem [shape: f32[1,32], index: 13, kind: input, shape index: {}]   ;;  %s3054_s14 = inlined_call_operand.vmem [shape: f32[1,32], index: 14, kind: input, shape index: {}]   ;;  %s3055_s15 = inlined_call_operand.vmem [shape: f32[1,32], index: 15, kind: input, shape index: {}]   ;;  %s3056_s16 = inlined_call_operand.hbm [shape: f32[32,32], index: 16, kind: output, shape index: {}]  }
   0x1   :  { %3062 = sst [smem:[#allocation19_spill]] %s3040_s0 }
   0x2   :  { %21 = vsyncpa [#allocation3], 0 }
   0x3   :  { %22 = vsyncpa [#allocation6], 0 }
   0x4   :  { %23 = vsyncpa [#allocation9], 0 }
   0x5   :  { %24 = vsyncpa [#allocation12], 0 }
   0x6   :  { %25 = vsyncpa [#allocation4], 0  ;;  %s2428_s21 = smov [#allocation5]   ;;  %s2429_s23 = smov [#allocation8]  }
   0x7   :  { %s45_s22 = sshll.u32 %s2428_s21, 4  ;;  %s71_s24 = sshll.u32 %s2429_s23, 4  ;;  %s46_s22 = int_to_ptr.vmem [resolvable:$true] %s45_s22  ;;  %s2525_s24 = int_to_ptr.vmem [resolvable:$true] %s71_s24 }
   0x8   :  { %s2264_s27 = scalar_lea.hbm %s3042_s2, 512 }
   0x9   :  { %p2265_p0 = scmp.ne.s32.totalorder %s3042_s2, %s2264_s27  ;;  %p2268_p1 = scmp.lt.u32.totalorder %s2264_s27, %s3042_s2 }
   0xb   :  { %p2270_p2 = pnand %p2268_p1, %p2265_p0 }
   0xd   :  { %2273 = shalt.err (!%p2270_p2)
}
   0xe   :  { %s2274_s17 = scalar_lea.vmem %s46_s22, 512  ;;  %p2279_p4 = scmp.lt.s32.totalorder %s46_s22, %s46_s22 }
   0xf   :  { %p2275_p3 = scmp.ne.s32.totalorder %s46_s22, %s2274_s17  ;;  %p2280_p5 = scmp.lt.s32.totalorder %s2274_s17, %s2274_s17 }
  0x11   :  { %p2281_p6 = por %p2280_p5, %p2279_p4 }
  0x13   :  { %p2282_p7 = pnand %p2281_p6, %p2275_p3 }
  0x15   :  { %2285 = shalt.err (!%p2282_p7)
}
  0x16   :  { %s3058_s18 = smov 128   ;;  %s3060_s19 = smov 8  }
  0x17   :  { %51 = dma.hbm_to_vmem [thread:$0]  %s3042_s2, 512, %s46_s22, [#allocation6], %s3058_s18, %s3058_s18, %s3060_s19  }
  0x18   :  { %s2286_s26 = scalar_lea.hbm %s3045_s5, 32 }
  0x19   :  { %p2287_p8 = scmp.ne.s32.totalorder %s3045_s5, %s2286_s26  ;;  %p2290_p9 = scmp.lt.u32.totalorder %s2286_s26, %s3045_s5 }
  0x1b   :  { %p2292_p10 = pnand %p2290_p9, %p2287_p8 }
  0x1d   :  { %2295 = shalt.err (!%p2292_p10)
}
  0x1e   :  { %s2296_s0 = scalar_lea.vmem %s2525_s24, 32  ;;  %p2301_p12 = scmp.lt.s32.totalorder %s2525_s24, %s2525_s24 }
  0x1f   :  { %p2297_p11 = scmp.ne.s32.totalorder %s2525_s24, %s2296_s0  ;;  %p2302_p13 = scmp.lt.s32.totalorder %s2296_s0, %s2296_s0 }
  0x21   :  { %p2303_p0 = por %p2302_p13, %p2301_p12 }
  0x23   :  { %p2304_p1 = pnand %p2303_p0, %p2297_p11 }
  0x25   :  { %2307 = shalt.err (!%p2304_p1)
}
  0x26   :  { %s2432_s2 = smov 16   ;;  %s2433_s22 = smov 1  }
  0x27   :  { %77 = dma.hbm_to_vmem [thread:$0]  %s3045_s5, 32, %s2525_s24, [#allocation9], %s2432_s2, %s2432_s2, %s2433_s22  }
  0x28   :  { %s2434_s21 = smov [#allocation2]   ;;  %s2435_s25 = smov [#allocation7]  }
  0x29   :  { %s33_s23 = sshll.u32 %s2434_s21, 4  ;;  %s57_s26 = sshll.u32 %s2435_s25, 4  ;;  %s34_s23 = int_to_ptr.vmem [resolvable:$true] %s33_s23  ;;  %s2559_s26 = int_to_ptr.vmem [resolvable:$true] %s57_s26 }
  0x2a   :  { %s2308_s29 = scalar_lea.hbm %s3041_s1, 512 }
  0x2b   :  { %p2309_p2 = scmp.ne.s32.totalorder %s3041_s1, %s2308_s29  ;;  %p2312_p3 = scmp.lt.u32.totalorder %s2308_s29, %s3041_s1 }
  0x2d   :  { %p2314_p4 = pnand %p2312_p3, %p2309_p2 }
  0x2f   :  { %2317 = shalt.err (!%p2314_p4)
}
  0x30   :  { %s2318_s5 = scalar_lea.vmem %s34_s23, 512  ;;  %p2323_p6 = scmp.lt.s32.totalorder %s34_s23, %s34_s23 }
  0x31   :  { %p2319_p5 = scmp.ne.s32.totalorder %s34_s23, %s2318_s5  ;;  %p2324_p7 = scmp.lt.s32.totalorder %s2318_s5, %s2318_s5 }
  0x33   :  { %p2325_p8 = por %p2324_p7, %p2323_p6 }
  0x35   :  { %p2326_p9 = pnand %p2325_p8, %p2319_p5 }
  0x37   :  { %2329 = shalt.err (!%p2326_p9)
}
  0x38   :  { %s3063_s24 = smov 8   ;;  %s3064_s2 = smov 128  }
  0x39   :  { %39 = dma.hbm_to_vmem [thread:$0]  %s3041_s1, 512, %s34_s23, [#allocation3], %s3064_s2, %s3064_s2, %s3063_s24  }
  0x3a   :  { %s2330_s18 = scalar_lea.hbm %s3043_s3, 512 }
  0x3b   :  { %p2331_p10 = scmp.ne.s32.totalorder %s3043_s3, %s2330_s18  ;;  %p2334_p11 = scmp.lt.u32.totalorder %s2330_s18, %s3043_s3 }
  0x3d   :  { %p2336_p12 = pnand %p2334_p11, %p2331_p10 }
  0x3f   :  { %2339 = shalt.err (!%p2336_p12)
}
  0x40   :  { %s2340_s29 = scalar_lea.vmem %s2559_s26, 512  ;;  %p2345_p0 = scmp.lt.s32.totalorder %s2559_s26, %s2559_s26 }
  0x41   :  { %p2341_p13 = scmp.ne.s32.totalorder %s2559_s26, %s2340_s29  ;;  %p2346_p1 = scmp.lt.s32.totalorder %s2340_s29, %s2340_s29 }
  0x43   :  { %p2347_p2 = por %p2346_p1, %p2345_p0 }
  0x45   :  { %p2348_p3 = pnand %p2347_p2, %p2341_p13 }
  0x47   :  { %2351 = shalt.err (!%p2348_p3)
}
  0x48   :  { %63 = dma.hbm_to_vmem [thread:$0]  %s3043_s3, 512, %s2559_s26, [#allocation6], %s3064_s2, %s3064_s2, %s3063_s24  }
  0x49   :  { %s2436_s30 = smov [#allocation10]   ;;  %s2437_s5 = smov [#allocation11]  }
  0x4a   :  { %s83_s0 = sshll.u32 %s2436_s30, 4  ;;  %s105_s22 = sshll.u32 %s2437_s5, 4  ;;  %s84_s0 = int_to_ptr.vmem [resolvable:$true] %s83_s0  ;;  %s2596_s22 = int_to_ptr.vmem [resolvable:$true] %s105_s22 }
  0x4b   :  { %s2352_s21 = scalar_lea.hbm %s3046_s6, 512 }
  0x4c   :  { %p2353_p4 = scmp.ne.s32.totalorder %s3046_s6, %s2352_s21  ;;  %p2356_p5 = scmp.lt.u32.totalorder %s2352_s21, %s3046_s6 }
  0x4e   :  { %p2358_p6 = pnand %p2356_p5, %p2353_p4 }
  0x50   :  { %2361 = shalt.err (!%p2358_p6)
}
  0x51   :  { %s2362_s3 = scalar_lea.vmem %s84_s0, 512  ;;  %p2367_p8 = scmp.lt.s32.totalorder %s84_s0, %s84_s0 }
  0x52   :  { %p2363_p7 = scmp.ne.s32.totalorder %s84_s0, %s2362_s3  ;;  %p2368_p9 = scmp.lt.s32.totalorder %s2362_s3, %s2362_s3 }
  0x54   :  { %p2369_p10 = por %p2368_p9, %p2367_p8 }
  0x56   :  { %p2370_p11 = pnand %p2369_p10, %p2363_p7 }
  0x58   :  { %2373 = shalt.err (!%p2370_p11)
}
  0x59   :  { %89 = dma.hbm_to_vmem [thread:$0]  %s3046_s6, 512, %s84_s0, [#allocation9], %s3064_s2, %s3064_s2, %s3063_s24  }
  0x5a   :  { %s2374_s23 = scalar_lea.hbm %s3052_s12, 512 }
  0x5b   :  { %p2375_p12 = scmp.ne.s32.totalorder %s3052_s12, %s2374_s23  ;;  %p2378_p13 = scmp.lt.u32.totalorder %s2374_s23, %s3052_s12 }
  0x5d   :  { %p2380_p0 = pnand %p2378_p13, %p2375_p12 }
  0x5f   :  { %2383 = shalt.err (!%p2380_p0)
}
  0x60   :  { %s2384_s21 = scalar_lea.vmem %s2596_s22, 512  ;;  %p2389_p2 = scmp.lt.s32.totalorder %s2596_s22, %s2596_s22 }
  0x61   :  { %p2385_p1 = scmp.ne.s32.totalorder %s2596_s22, %s2384_s21  ;;  %p2390_p3 = scmp.lt.s32.totalorder %s2384_s21, %s2384_s21 }
  0x63   :  { %p2391_p4 = por %p2390_p3, %p2389_p2 }
  0x65   :  { %p2392_p5 = pnand %p2391_p4, %p2385_p1 }
  0x67   :  { %2395 = shalt.err (!%p2392_p5)
}
  0x68   :  { %111 = dma.hbm_to_vmem [thread:$0]  %s3052_s12, 512, %s2596_s22, [#allocation12], %s3064_s2, %s3064_s2, %s3063_s24  }
  0x69   :  { %2418 = dma.done.wait [#allocation3], 512  }
  0x6a   :  { %2419 = vsyncadd [#allocation3], 4294966784 }
  0x6b   :  { %2420 = dma.done.wait [#allocation6], 1024  }
  0x6c   :  { %2421 = vsyncadd [#allocation6], 4294966272 }
  0x6d   :  { %2422 = dma.done.wait [#allocation9], 544  }
  0x6e   :  { %2423 = vsyncadd [#allocation9], 4294966752 }
  0x6f   :  { %2424 = dma.done.wait [#allocation12], 512  }
  0x70   :  { %2425 = vsyncadd [#allocation12], 4294966784  ;;  %v2438_v0 = vmov 0   ;;  %v144_v1 = vld [vmem:[#allocation5] sm:$0xff]  ;;  %v145_v2 = vld [vmem:[#allocation5 + $0x8] sm:$0xff]  ;;  %vm163_vm0 = vcmask 261120  }
  0x71   :  { %2198 = vset.pattern.permute.xlu0 %v2438_v0  ;;  %2199 = vset.pattern.permute.xlu1 %v2438_v0  ;;  %v152_v3 = vld [vmem:[%s3044_s4] sm:$0xff]  ;;  %v2636_v4 = vpack.c.bf16 %v145_v2, %v144_v1  ;;  %v153_v5 = vld [vmem:[%s3044_s4 + $0x8] sm:$0xff]  ;;  %v146_v6 = vld [vmem:[#allocation5 + $0x10] sm:$0xff]  ;;  %s3065_s1 = sld [smem:[#allocation19_spill]]  ;;  %vm464_vm1 = vcmask 130048  }
  0x72   :  { %v147_v7 = vld [vmem:[#allocation5 + $0x18] sm:$0xff]  ;;  %v2094_v8 = vpack.c.bf16 %v153_v5, %v152_v3  ;;  %v261_v10 = vld [vmem:[#allocation10] sm:$0xff]  ;;  %v154_v11 = vld [vmem:[%s3044_s4 + $0x10] sm:$0xff] }
  0x73   :  { %v2641_v9 = vpack.c.bf16 %v147_v7, %v146_v6  ;;  %v155_v12 = vld [vmem:[%s3044_s4 + $0x18] sm:$0xff]  ;;  %2103 = vmatprep.subr.bf16.mxu1 %v2636_v4  ;;  %1950 = vmatprep.mubr.msk.f32.mxu1 %vm163_vm0, %v261_v10  ;;  %v263_v15 = vld [vmem:[%s3047_s7] sm:$0xff]  ;;  %v262_v16 = vld [vmem:[#allocation10 + $0x8] sm:$0xff] }
  0x74   :  { %v2098_v13 = vpack.c.bf16 %v155_v12, %v154_v11  ;;  %2105 = vmatpush3.bf16.msra.mxu1 %v2636_v4  ;;  %2095 = vmatprep.subr.bf16.mxu0 %v2094_v8  ;;  %v264_v17 = vld [vmem:[%s3047_s7 + $0x8] sm:$0xff]  ;;  %v1761_v24 = vld [vmem:[#allocation8] ss:$0 sm:$0xff]  ;;  %v358_v39 = vld [vmem:[%s3048_s8 + $0x10] sm:$0xff] }
  0x75   :  { %2107 = vmatprep.subr.bf16.mxu1 %v2641_v9  ;;  %2097 = vmatpush3.bf16.msra.mxu0 %v2094_v8  ;;  %v356_v37 = vld [vmem:[%s3048_s8] sm:$0xff]  ;;  %v357_v38 = vld [vmem:[%s3048_s8 + $0x8] sm:$0xff]  ;;  %v359_v41 = vld [vmem:[%s3048_s8 + $0x18] sm:$0xff] }
  0x76   :  { %2099 = vmatprep.subr.bf16.mxu0 %v2098_v13  ;;  %267 = vperm.xlu0 %2198, %v263_v15   ;;  %v2110_v40 = vpack.c.bf16 %v357_v38, %v356_v37  ;;  %v2702_v42 = vld [vmem:[#allocation2] sm:$0xff]  ;;  %v2114_v43 = vpack.c.bf16 %v359_v41, %v358_v39  ;;  %v2706_v44 = vld [vmem:[#allocation2 + $0x8] sm:$0xff]  ;;  %v2708_v45 = vld [vmem:[#allocation2 + $0x10] sm:$0xff] }
  0x77   :  { %v136_v14 = vld [vmem:[%s3065_s1] sm:$0xff]  ;;  %v2667_v18 = vld [vmem:[%s3065_s1 + $0x8] sm:$0xff]  ;;  %v2672_v19 = vld [vmem:[%s3065_s1 + $0x10] sm:$0xff] }
  0x78   :  { %1936 = vmatprep.mubr.msk.f32.mxu0 %vm163_vm0, %v136_v14  ;;  %2109 = vmatpush3.bf16.msra.mxu1 %v2641_v9  ;;  %v2682_v20 = vld [vmem:[%s3065_s1 + $0x18] sm:$0xff]  ;;  %v2719_v47 = vld [vmem:[#allocation7] sm:$0xff]  ;;  %v2721_v49 = vld [vmem:[#allocation7 + $0x8] sm:$0xff] }
  0x79   :  { %2101 = vmatpush3.bf16.msra.mxu0 %v2098_v13  ;;  %v2714_v46 = vld [vmem:[#allocation2 + $0x18] sm:$0xff]  ;;  %v2726_v53 = vld [vmem:[#allocation7 + $0x10] sm:$0xff]  ;;  %v1782_v37 = vld [vmem:[%s3044_s4 + $0x28] sm:$0xff] }
  0x7a   :  { %272 = vperm.xlu0 %2198, %v264_v17   ;;  %2111 = vmatprep.subr.bf16.mxu0 %v2110_v40  ;;  %v2724_v52 = vld [vmem:[#allocation7 + $0x18] sm:$0xff]  ;;  %v1783_v39 = vld [vmem:[%s3044_s4 + $0x30] sm:$0xff] }
  0x7b   :  { %1951 = vmatmul.mubr.msk.f32.vlgmr.msra.gmra.mrb[0].mxu1 %vm163_vm0, %v262_v16  ;;  %v1791_v63 = vld [vmem:[%s3047_s7 + $0x18] sm:$0xff] }
  0x7c   :  { %1937 = vmatmul.mubr.msk.f32.vlgmr.msra.gmra.mrb[0].mxu0 %vm163_vm0, %v2667_v18 }
  0x7d   :  { %1939 = vmatprep.mubr.msk.f32.mxu0 %vm163_vm0, %v2672_v19  ;;  %2113 = vmatpush3.bf16.msra.mxu0 %v2110_v40  ;;  %v1784_v40 = vld [vmem:[%s3044_s4 + $0x38] sm:$0xff] }
  0x7e   :  { %2115 = vmatprep.subr.bf16.mxu0 %v2114_v43  ;;  %v2134_v41 = vpack.c.bf16 %v1784_v40, %v1783_v39 }
  0x80   :  { %1940 = vmatmul.mubr.msk.f32.gmra.mrb[2].mxu0 %vm163_vm0, %v2682_v20 }
  0x81   :  { %1961 = vmatprep.mubr.msk.f32.mxu0 %vm163_vm0, %v2702_v42  ;;  %2117 = vmatpush3.bf16.msra.mxu0 %v2114_v43  ;;  %v1790_v43 = vld [vmem:[%s3047_s7 + $0x10] sm:$0xff] }
  0x84   :  { %1962 = vmatmul.mubr.msk.f32.vlgmr.msra.gmra.mrb[4].mxu0 %vm163_vm0, %v2706_v44 }
  0x85   :  { %1964 = vmatprep.mubr.msk.f32.mxu0 %vm163_vm0, %v2708_v45 }
  0x88   :  { %1965 = vmatmul.mubr.msk.f32.gmra.mrb[6].mxu0 %vm163_vm0, %v2714_v46 }
  0x89   :  { %1999 = vmatprep.mubr.msk.f32.mxu0 %vm163_vm0, %v136_v14 }
  0xf5   :  { %v268_v21 = vpop.permute.xlu0 %267 }
  0xf9   :  { %v273_v22 = vpop.permute.xlu0 %272 }
 0x14e   :  { %v1952_v23 = vpop.f32.mrb[0].mxu1 }
 0x14f   :  { %v353_v25 = vadd.f32 %v1952_v23, %v273_v22  ;;  %v347_v26 = vpop.f32.mrb[1].mxu1  ;;  %v1938_v27 = vpop.f32.mrb[0].mxu0 }
 0x150   :  { %v348_v28 = vadd.f32 %v347_v26, %v268_v21  ;;  %v242_v29 = vpop.f32.mrb[1].mxu0  ;;  %v248_v35 = vadd.f32 %v1938_v27, %v1761_v24  ;;  %v1768_v26 = vld [vmem:[%s3049_s9] ss:$0 sm:$0xff] }
 0x151   :  { %v243_v30 = vadd.f32 %v1761_v24, %v242_v29 }
 0x152   :  { %v2118_v31 = vpack.c.bf16 %v353_v25, %v348_v28 }
 0x153   :  { %1971 = vmatprep.mubr.msk.f32.mxu1 %vm464_vm1, %v243_v30  ;;  %v1941_v32 = vpop.f32.mrb[2].mxu0 }
 0x154   :  { %2119 = vmatprep.subr.bf16.mxu1 %v2118_v31  ;;  %v252_v33 = vpop.f32.mrb[3].mxu0  ;;  %v258_v36 = vadd.f32 %v1941_v32, %v1761_v24 }
 0x155   :  { %2121 = vmatpush3.bf16.msra.mxu1 %v2118_v31  ;;  %v253_v34 = vadd.f32 %v1761_v24, %v252_v33 }
 0x157   :  { %v1963_v25 = vpop.f32.mrb[4].mxu0 }
 0x158   :  { %1972 = vmatmul.mubr.msk.f32.vlgmr.msra.gmra.mrb[2].mxu1 %vm464_vm1, %v248_v35  ;;  %v445_v27 = vpop.f32.mrb[5].mxu0  ;;  %v451_v28 = vadd.f32 %v1963_v25, %v1768_v26 }
 0x159   :  { %1974 = vmatprep.mubr.msk.f32.mxu1 %vm464_vm1, %v253_v34  ;;  %v446_v29 = vadd.f32 %v1768_v26, %v445_v27  ;;  %v1795_v27 = vld [vmem:[%s3048_s8 + $0x28] sm:$0xff] }
 0x15b   :  { %v2122_v30 = vpack.c.bf16 %v451_v28, %v446_v29  ;;  %v1966_v31 = vpop.f32.mrb[6].mxu0  ;;  %v1796_v28 = vld [vmem:[%s3048_s8 + $0x30] sm:$0xff] }
 0x15c   :  { %1975 = vmatmul.mubr.msk.f32.gmra.mrb[4].mxu1 %vm464_vm1, %v258_v36  ;;  %v455_v32 = vpop.f32.mrb[7].mxu0  ;;  %v461_v33 = vadd.f32 %v1966_v31, %v1768_v26  ;;  %v1781_v36 = vld [vmem:[%s3044_s4 + $0x20] sm:$0xff] }
 0x15d   :  { %v456_v34 = vadd.f32 %v1768_v26, %v455_v32  ;;  %2123 = vmatprep.subr.bf16.mxu1 %v2122_v30  ;;  %v2130_v38 = vpack.c.bf16 %v1782_v37, %v1781_v36  ;;  %v1794_v26 = vld [vmem:[%s3048_s8 + $0x20] sm:$0xff] }
 0x15e   :  { %2125 = vmatpush3.bf16.msra.mxu1 %v2122_v30  ;;  %v2146_v29 = vpack.c.bf16 %v1795_v27, %v1794_v26  ;;  %v1797_v30 = vld [vmem:[%s3048_s8 + $0x38] sm:$0xff] }
 0x15f   :  { %v2126_v35 = vpack.c.bf16 %v461_v33, %v456_v34  ;;  %2131 = vmatprep.subr.bf16.mxu0 %v2130_v38  ;;  %v2150_v31 = vpack.c.bf16 %v1797_v30, %v1796_v28 }
 0x160   :  { %2133 = vmatpush3.bf16.msra.mxu0 %v2130_v38 }
 0x161   :  { %2127 = vmatprep.subr.bf16.mxu1 %v2126_v35  ;;  %2135 = vmatprep.subr.bf16.mxu0 %v2134_v41 }
 0x162   :  { %2129 = vmatpush3.bf16.msra.mxu1 %v2126_v35 }
 0x163   :  { %2139 = vmatprep.subr.bf16.mxu1 %v2636_v4 }
 0x164   :  { %2137 = vmatpush3.bf16.msra.mxu0 %v2134_v41 }
 0x165   :  { %2147 = vmatprep.subr.bf16.mxu0 %v2146_v29 }
 0x167   :  { %2000 = vmatmul.mubr.msk.f32.vlgmr.msra.gmra.mrb[8].mxu0 %vm163_vm0, %v2667_v18 }
 0x168   :  { %2002 = vmatprep.mubr.msk.f32.mxu0 %vm163_vm0, %v2672_v19  ;;  %2149 = vmatpush3.bf16.msra.mxu0 %v2146_v29 }
 0x169   :  { %2151 = vmatprep.subr.bf16.mxu0 %v2150_v31 }
 0x16b   :  { %2003 = vmatmul.mubr.msk.f32.gmra.mrb[10].mxu0 %vm163_vm0, %v2682_v20 }
 0x16c   :  { %2024 = vmatprep.mubr.msk.f32.mxu0 %vm163_vm0, %v2702_v42  ;;  %2153 = vmatpush3.bf16.msra.mxu0 %v2150_v31 }
 0x16f   :  { %2025 = vmatmul.mubr.msk.f32.vlgmr.msra.gmra.mrb[12].mxu0 %vm163_vm0, %v2706_v44 }
 0x170   :  { %2027 = vmatprep.mubr.msk.f32.mxu0 %vm163_vm0, %v2708_v45 }
 0x173   :  { %2028 = vmatmul.mubr.msk.f32.gmra.mrb[14].mxu0 %vm163_vm0, %v2714_v46 }
 0x22b   :  { %v1973_v48 = vpop.f32.mrb[2].mxu1 }
 0x22c   :  { %v543_v50 = vpop.f32.mrb[3].mxu1  ;;  %v549_v54 = vadd.f32 %v1973_v48, %v2721_v49 }
 0x22d   :  { %v544_v51 = vadd.f32 %v543_v50, %v2719_v47 }
 0x22e   :  { %v565_v61 = vsel %vm163_vm0, %v549_v54, -inf }
 0x22f   :  { %v1976_v55 = vpop.f32.mrb[4].mxu1  ;;  %v562_v56 = vsel %vm163_vm0, %v544_v51, -inf }
 0x230   :  { %v553_v57 = vpop.f32.mrb[5].mxu1  ;;  %563 = vmax.xlane.f32.xlu1 %v562_v56  ;;  %v559_v58 = vadd.f32 %v1976_v55, %v2724_v52 }
 0x231   :  { %v554_v59 = vadd.f32 %v553_v57, %v2726_v53 }
 0x232   :  { %v571_v62 = vsel %vm163_vm0, %v559_v58, -inf }
 0x233   :  { %v568_v60 = vsel %vm163_vm0, %v554_v59, -inf }
 0x234   :  { %569 = vmax.xlane.f32.xlu0 %v568_v60  ;;  %566 = vmax.xlane.f32.xlu1 %v565_v61  ;;  %v803_v60 = vld [vmem:[#allocation10 + $0x18] sm:$0xff] }
 0x238   :  { %572 = vmax.xlane.f32.xlu1 %v571_v62  ;;  %v1785_v62 = vld [vmem:[#allocation8 + $0x1] ss:$0 sm:$0xff] }
 0x23a   :  { %v2001_v61 = vpop.f32.mrb[8].mxu0 }
 0x24a   :  { %814 = vperm.xlu0 %2198, %v1791_v63   ;;  %v788_v63 = vadd.f32 %v2001_v61, %v1785_v62 }
 0x2bd   :  { %v564_v0 = vpop.xlane.xlu1 %563 }
 0x2be   :  { %v574_v1 = vsub.f32 %v544_v51, %v564_v0 }
 0x2c0   :  { %v578_v7 = vmul.f32 1.442695, %v574_v1 }
 0x2c1   :  { %v567_v2 = vpop.xlane.xlu1 %566  ;;  %v570_v3 = vpop.xlane.xlu0 %569 }
 0x2c2   :  { %v575_v5 = vsub.f32 %v549_v54, %v567_v2  ;;  %v576_v8 = vsub.f32 %v554_v59, %v570_v3  ;;  %v802_v59 = vld [vmem:[#allocation10 + $0x10] sm:$0xff] }
 0x2c4   :  { %v580_v6 = vmul.f32 1.442695, %v575_v5  ;;  %v582_v11 = vmul.f32 1.442695, %v576_v8 }
 0x2c5   :  { %v573_v10 = vpop.xlane.xlu1 %572 }
 0x2c6   :  { %2200 = vpow2.f32 %v580_v6  ;;  %v577_v12 = vsub.f32 %v559_v58, %v573_v10 }
 0x2c7   :  { %2202 = vpow2.f32 %v578_v7 }
 0x2c8   :  { %2204 = vpow2.f32 %v582_v11  ;;  %v584_v13 = vmul.f32 1.442695, %v577_v12 }
 0x2c9   :  { %v815_v11 = vpop.permute.xlu0 %814 }
 0x2ca   :  { %2206 = vpow2.f32 %v584_v13 }
 0x2d0   :  { %v2201_v14 = vpop.eup %2200 }
 0x2d1   :  { %v589_v15 = vsel %vm163_vm0, %v2201_v14, 0.0  ;;  %v2203_v16 = vpop.eup %2202 }
 0x2d2   :  { %590 = vadd.xlane.f32.xlu1 %v589_v15  ;;  %v586_v17 = vsel %vm163_vm0, %v2203_v16, 0.0  ;;  %v2205_v21 = vpop.eup %2204  ;;  %v1234_v15 = vld [vmem:[%s3050_s10] sm:$0xff] }
 0x2d3   :  { %v592_v22 = vsel %vm163_vm0, %v2205_v21, 0.0 }
 0x2d4   :  { %v2207_v23 = vpop.eup %2206 }
 0x2d5   :  { %v595_v24 = vsel %vm163_vm0, %v2207_v23, 0.0 }
 0x2d6   :  { %587 = vadd.xlane.f32.xlu1 %v586_v17 }
 0x2da   :  { %593 = vadd.xlane.f32.xlu1 %v592_v22 }
 0x2de   :  { %596 = vadd.xlane.f32.xlu1 %v595_v24  ;;  %v1237_v24 = vld [vmem:[%s3050_s10 + $0x18] sm:$0xff] }
 0x2ef   :  { %809 = vperm.xlu1 %2199, %v1790_v43  }
 0x35f   :  { %v591_v48 = vpop.xlane.xlu1 %590 }
 0x360   :  { %2208 = vrcp.f32 %v591_v48 }
 0x363   :  { %v588_v50 = vpop.xlane.xlu1 %587 }
 0x364   :  { %2210 = vrcp.f32 %v588_v50 }
 0x367   :  { %v594_v51 = vpop.xlane.xlu1 %593 }
 0x368   :  { %2212 = vrcp.f32 %v594_v51 }
 0x36a   :  { %v2209_v55 = vpop.eup %2208 }
 0x36b   :  { %v597_v54 = vpop.xlane.xlu1 %596  ;;  %v603_v57 = vmul.f32 %v2209_v55, %v2201_v14 }
 0x36c   :  { %2214 = vrcp.f32 %v597_v54 }
 0x36e   :  { %v2211_v56 = vpop.eup %2210 }
 0x36f   :  { %v602_v18 = vmul.f32 %v2211_v56, %v2203_v16  ;;  %v810_v10 = vpop.permute.xlu1 %809  ;;  %v1235_v16 = vld [vmem:[%s3050_s10 + $0x8] sm:$0xff] }
 0x370   :  { %v2166_v22 = vpack.c.bf16 %v1235_v16, %v1234_v15  ;;  %v1446_v16 = vld [vmem:[#allocation11] sm:$0xff] }
 0x371   :  { %1985 = vmatprep.mubr.msk.f32.mxu1 %vm163_vm0, %v602_v18 }
 0x372   :  { %v2213_v19 = vpop.eup %2212  ;;  %1986 = vmatmul.mubr.msk.f32.vlgmr.msra.gmra.mrb[6].mxu1 %vm163_vm0, %v603_v57 }
 0x373   :  { %v604_v20 = vmul.f32 %v2213_v19, %v2205_v21  ;;  %2141 = vmatpush3.bf16.msra.mxu1 %v2636_v4  ;;  %v782_v4 = vpop.f32.mrb[9].mxu0 }
 0x374   :  { %2143 = vmatprep.subr.bf16.mxu1 %v2641_v9  ;;  %v783_v0 = vadd.f32 %v1785_v62, %v782_v4  ;;  %v2004_v1 = vpop.f32.mrb[10].mxu0 }
 0x375   :  { %1988 = vmatprep.mubr.msk.f32.mxu1 %vm163_vm0, %v604_v20  ;;  %v798_v2 = vadd.f32 %v2004_v1, %v1785_v62  ;;  %v792_v3 = vpop.f32.mrb[11].mxu0  ;;  %v1799_v1 = vld [vmem:[%s3049_s9 + $0x1] ss:$0 sm:$0xff] }
 0x376   :  { %v2215_v42 = vpop.eup %2214  ;;  %v793_v5 = vadd.f32 %v1785_v62, %v792_v3 }
 0x377   :  { %v605_v58 = vmul.f32 %v2215_v42, %v2207_v23  ;;  %2145 = vmatpush3.bf16.msra.mxu1 %v2641_v9  ;;  %v1236_v23 = vld [vmem:[%s3050_s10 + $0x10] sm:$0xff] }
 0x378   :  { %v2170_v25 = vpack.c.bf16 %v1237_v24, %v1236_v23  ;;  %v1449_v23 = vld [vmem:[#allocation11 + $0x18] sm:$0xff] }
 0x379   :  { %1989 = vmatmul.mubr.msk.f32.gmra.mrb[8].mxu1 %vm163_vm0, %v605_v58 }
 0x37a   :  { %2013 = vmatprep.mubr.msk.f32.mxu1 %vm163_vm0, %v802_v59 }
 0x37d   :  { %2014 = vmatmul.mubr.msk.f32.vlgmr.msra.gmra.mrb[10].mxu1 %vm163_vm0, %v803_v60 }
 0x37e   :  { %2034 = vmatprep.mubr.msk.f32.mxu1 %vm464_vm1, %v783_v0  ;;  %v2026_v0 = vpop.f32.mrb[12].mxu0 }
 0x37f   :  { %v983_v3 = vadd.f32 %v2026_v0, %v1799_v1 }
 0x445   :  { %v2779_v9 = vpop.f32.mrb[6].mxu1 }
 0x446   :  { %v2781_v6 = vpop.f32.mrb[7].mxu1 }
 0x44c   :  { %v2783_v7 = vpop.f32.mrb[8].mxu1 }
 0x44d   :  { %v2785_v8 = vpop.f32.mrb[9].mxu1 }
 0x450   :  { %v2015_v12 = vpop.f32.mrb[10].mxu1 }
 0x451   :  { %v895_v13 = vadd.f32 %v2015_v12, %v815_v11  ;;  %v889_v14 = vpop.f32.mrb[11].mxu1 }
 0x452   :  { %v890_v17 = vadd.f32 %v889_v14, %v810_v10 }
 0x454   :  { %v2154_v21 = vpack.c.bf16 %v895_v13, %v890_v17  ;;  %v1447_v17 = vld [vmem:[#allocation11 + $0x8] sm:$0xff] }
 0x456   :  { %2155 = vmatprep.subr.bf16.mxu1 %v2154_v21 }
 0x457   :  { %2157 = vmatpush3.bf16.msra.mxu1 %v2154_v21  ;;  %v2174_v21 = vpack.c.bf16 %v1447_v17, %v1446_v16 }
 0x458   :  { %2167 = vmatprep.subr.bf16.mxu1 %v2166_v22 }
 0x45a   :  { %2035 = vmatmul.mubr.msk.f32.vlgmr.msra.gmra.mrb[12].mxu1 %vm464_vm1, %v788_v63 }
 0x45b   :  { %2169 = vmatpush3.bf16.msra.mxu1 %v2166_v22  ;;  %2037 = vmatprep.mubr.msk.f32.mxu1 %vm464_vm1, %v793_v5  ;;  %v1448_v22 = vld [vmem:[#allocation11 + $0x10] sm:$0xff] }
 0x45c   :  { %2171 = vmatprep.subr.bf16.mxu1 %v2170_v25  ;;  %v2178_v24 = vpack.c.bf16 %v1449_v23, %v1448_v22  ;;  %v2920_v22 = vld [vmem:[%s3053_s13] ss:$0 sm:$0xff] }
 0x45e   :  { %2038 = vmatmul.mubr.msk.f32.gmra.mrb[14].mxu1 %vm464_vm1, %v798_v2  ;;  %v977_v2 = vpop.f32.mrb[13].mxu0 }
 0x45f   :  { %2173 = vmatpush3.bf16.msra.mxu1 %v2170_v25  ;;  %2062 = vmatprep.mubr.msk.f32.mxu1 %vm163_vm0, %v2781_v6  ;;  %v978_v5 = vadd.f32 %v1799_v1, %v977_v2  ;;  %v2029_v11 = vpop.f32.mrb[14].mxu0  ;;  %v2862_v25 = vld [vmem:[%s3051_s11] ss:$0 sm:$0xff] }
 0x460   :  { %v987_v12 = vpop.f32.mrb[15].mxu0  ;;  %v993_v13 = vadd.f32 %v2029_v11, %v1799_v1  ;;  %2182 = vmatprep.subr.bf16.mxu1 %v2174_v21 }
 0x461   :  { %v2158_v10 = vpack.c.bf16 %v983_v3, %v978_v5  ;;  %v988_v14 = vadd.f32 %v1799_v1, %v987_v12 }
 0x462   :  { %2063 = vmatmul.mubr.msk.f32.vlgmr.msra.gmra.mrb[16].mxu1 %vm163_vm0, %v2779_v9 }
 0x463   :  { %2065 = vmatprep.mubr.msk.f32.mxu1 %vm163_vm0, %v2785_v8  ;;  %2159 = vmatprep.subr.bf16.mxu0 %v2158_v10  ;;  %v2162_v15 = vpack.c.bf16 %v993_v13, %v988_v14 }
 0x464   :  { %2161 = vmatpush3.bf16.msra.mxu0 %v2158_v10  ;;  %2184 = vmatpush3.bf16.msra.mxu1 %v2174_v21 }
 0x465   :  { %2163 = vmatprep.subr.bf16.mxu0 %v2162_v15  ;;  %2183 = vmatprep.subr.bf16.mxu1 %v2178_v24 }
 0x466   :  { %2066 = vmatmul.mubr.msk.f32.gmra.mrb[18].mxu1 %vm163_vm0, %v2783_v7 }
 0x468   :  { %2165 = vmatpush3.bf16.msra.mxu0 %v2162_v15  ;;  %2185 = vmatpush3.bf16.msra.mxu1 %v2178_v24 }
 0x469   :  { %2175 = vmatprep.subr.bf16.mxu0 %v2174_v21 }
 0x52d   :  { %v2036_v32 = vpop.f32.mrb[12].mxu1 }
 0x52e   :  { %v1080_v33 = vadd.f32 %v2036_v32, %v2721_v49  ;;  %v1074_v34 = vpop.f32.mrb[13].mxu1 }
 0x52f   :  { %v1075_v35 = vadd.f32 %v1074_v34, %v2719_v47 }
 0x530   :  { %v1096_v36 = vsel %vm163_vm0, %v1080_v33, -inf }
 0x531   :  { %1097 = vmax.xlane.f32.xlu0 %v1096_v36  ;;  %v2039_v37 = vpop.f32.mrb[14].mxu1  ;;  %v1093_v38 = vsel %vm163_vm0, %v1075_v35, -inf }
 0x532   :  { %v1084_v39 = vpop.f32.mrb[15].mxu1  ;;  %1094 = vmax.xlane.f32.xlu1 %v1093_v38  ;;  %v1090_v45 = vadd.f32 %v2039_v37, %v2724_v52 }
 0x533   :  { %v1085_v44 = vadd.f32 %v1084_v39, %v2726_v53 }
 0x534   :  { %v1102_v47 = vsel %vm163_vm0, %v1090_v45, -inf }
 0x535   :  { %v2834_v40 = vpop.f32.mrb[16].mxu1  ;;  %v1099_v46 = vsel %vm163_vm0, %v1085_v44, -inf }
 0x536   :  { %v1335_v49 = vpop.f32.mrb[17].mxu1  ;;  %1100 = vmax.xlane.f32.xlu1 %v1099_v46  ;;  %v2867_v27 = vadd.f32 %v2834_v40, %v2862_v25 }
 0x537   :  { %v1336_v26 = vadd.f32 %v2862_v25, %v1335_v49 }
 0x538   :  { %v1375_v30 = vmul.f32 %v2867_v27, %v2867_v27 }
 0x539   :  { %v2837_v41 = vpop.f32.mrb[18].mxu1  ;;  %v1374_v28 = vmul.f32 %v1336_v26, %v1336_v26 }
 0x53a   :  { %v1345_v43 = vpop.f32.mrb[19].mxu1  ;;  %1103 = vmax.xlane.f32.xlu1 %v1102_v47  ;;  %v2876_v32 = vadd.f32 %v2837_v41, %v2862_v25  ;;  %v1383_v34 = vmul.f32 %v1375_v30, %v2867_v27 }
 0x53b   :  { %v2870_v29 = vadd.f32 %v2862_v25, %v1345_v43  ;;  %v1382_v31 = vmul.f32 %v1374_v28, %v1336_v26 }
 0x53c   :  { %v1377_v36 = vmul.f32 %v2876_v32, %v2876_v32  ;;  %v1391_v38 = vmul.f32 0.044715, %v1383_v34 }
 0x53e   :  { %v1399_v40 = vadd.f32 %v1391_v38, %v2867_v27 }
 0x540   :  { %v1407_v47 = vmul.f32 0.7978846, %v1399_v40 }
 0x5be   :  { %v1098_v48 = vpop.xlane.xlu0 %1097 }
 0x5bf   :  { %v1106_v50 = vsub.f32 %v1080_v33, %v1098_v48  ;;  %v1095_v51 = vpop.xlane.xlu1 %1094  ;;  %v1376_v33 = vmul.f32 %v2870_v29, %v2870_v29 }
 0x5c0   :  { %v1105_v54 = vsub.f32 %v1075_v35, %v1095_v51  ;;  %v1390_v35 = vmul.f32 0.044715, %v1382_v31 }
 0x5c1   :  { %v1111_v55 = vmul.f32 1.442695, %v1106_v50  ;;  %v1384_v37 = vmul.f32 %v1376_v33, %v2870_v29 }
 0x5c2   :  { %v1109_v53 = vmul.f32 1.442695, %v1105_v54  ;;  %v1398_v39 = vadd.f32 %v1390_v35, %v1336_v26 }
 0x5c3   :  { %2216 = vpow2.f32 %v1111_v55  ;;  %v1101_v52 = vpop.xlane.xlu1 %1100 }
 0x5c4   :  { %2218 = vpow2.f32 %v1109_v53  ;;  %v1107_v56 = vsub.f32 %v1085_v44, %v1101_v52  ;;  %v1385_v44 = vmul.f32 %v1377_v36, %v2876_v32  ;;  %v1406_v46 = vmul.f32 0.7978846, %v1398_v39 }
 0x5c6   :  { %v1113_v18 = vmul.f32 1.442695, %v1107_v56  ;;  %v1393_v49 = vmul.f32 0.044715, %v1385_v44 }
 0x5c7   :  { %v1104_v57 = vpop.xlane.xlu1 %1103 }
 0x5c8   :  { %2220 = vpow2.f32 %v1113_v18  ;;  %v1108_v19 = vsub.f32 %v1090_v45, %v1104_v57  ;;  %v1392_v45 = vmul.f32 0.044715, %v1384_v37  ;;  %v1401_v43 = vadd.f32 %v1393_v49, %v2876_v32 }
 0x5ca   :  { %v1115_v20 = vmul.f32 1.442695, %v1108_v19  ;;  %v1400_v41 = vadd.f32 %v1392_v45, %v2870_v29  ;;  %v1409_v54 = vmul.f32 0.7978846, %v1401_v43 }
 0x5cc   :  { %2222 = vpow2.f32 %v1115_v20  ;;  %v1408_v50 = vmul.f32 0.7978846, %v1400_v41 }
 0x5cd   :  { %v2840_v42 = vpop.eup %2216  ;;  %2224 = vtanh.f32 %v1406_v46 }
 0x5ce   :  { %v2842_v58 = vpop.eup %2218  ;;  %v1120_v59 = vsel %vm163_vm0, %v2840_v42, 0.0 }
 0x5cf   :  { %1121 = vadd.xlane.f32.xlu0 %v1120_v59  ;;  %v1117_v60 = vsel %vm163_vm0, %v2842_v58, 0.0 }
 0x5d0   :  { %1118 = vadd.xlane.f32.xlu1 %v1117_v60 }
 0x5d2   :  { %v2848_v61 = vpop.eup %2220 }
 0x5d3   :  { %v1123_v62 = vsel %vm163_vm0, %v2848_v61, 0.0 }
 0x5d4   :  { %1124 = vadd.xlane.f32.xlu1 %v1123_v62 }
 0x5d6   :  { %v2852_v63 = vpop.eup %2222 }
 0x5d7   :  { %v1126_v4 = vsel %vm163_vm0, %v2852_v63, 0.0  ;;  %v2225_v52 = vpop.eup %2224 }
 0x5d8   :  { %1127 = vadd.xlane.f32.xlu0 %v1126_v4  ;;  %v1422_v59 = vadd.f32 1.0, %v2225_v52 }
 0x5da   :  { %v1430_v2 = vmul.f32 0.5, %v1422_v59 }
 0x5dc   :  { %v1438_v11 = vmul.f32 %v1430_v2, %v1336_v26 }
 0x65c   :  { %v1122_v48 = vpop.xlane.xlu0 %1121 }
 0x65d   :  { %2226 = vrcp.f32 %v1122_v48  ;;  %v1119_v51 = vpop.xlane.xlu1 %1118 }
 0x65e   :  { %2228 = vrcp.f32 %v1119_v51 }
 0x65f   :  { %2230 = vtanh.f32 %v1407_v47 }
 0x660   :  { %2232 = vtanh.f32 %v1408_v50 }
 0x661   :  { %v1125_v55 = vpop.xlane.xlu1 %1124 }
 0x662   :  { %2234 = vrcp.f32 %v1125_v55 }
 0x663   :  { %2236 = vtanh.f32 %v1409_v54 }
 0x665   :  { %v1128_v53 = vpop.xlane.xlu0 %1127 }
 0x666   :  { %2238 = vrcp.f32 %v1128_v53 }
 0x667   :  { %v2227_v56 = vpop.eup %2226 }
 0x668   :  { %v2229_v18 = vpop.eup %2228  ;;  %v1134_v20 = vmul.f32 %v2227_v56, %v2840_v42 }
 0x669   :  { %v1133_v57 = vmul.f32 %v2229_v18, %v2842_v58  ;;  %v2231_v19 = vpop.eup %2230 }
 0x66a   :  { %v2233_v60 = vpop.eup %2232  ;;  %v1423_v4 = vadd.f32 1.0, %v2231_v19 }
 0x66b   :  { %2048 = vmatprep.mubr.msk.f32.mxu0 %vm163_vm0, %v1133_v57  ;;  %v1424_v3 = vadd.f32 1.0, %v2233_v60 }
 0x66c   :  { %v2235_v62 = vpop.eup %2234  ;;  %2049 = vmatmul.mubr.msk.f32.vlgmr.msra.gmra.mrb[16].mxu0 %vm163_vm0, %v1134_v20  ;;  %v1431_v5 = vmul.f32 0.5, %v1423_v4 }
 0x66d   :  { %v1135_v0 = vmul.f32 %v2235_v62, %v2848_v61  ;;  %2177 = vmatpush3.bf16.msra.mxu0 %v2174_v21  ;;  %v2237_v1 = vpop.eup %2236  ;;  %v1432_v12 = vmul.f32 0.5, %v1424_v3 }
 0x66e   :  { %2179 = vmatprep.subr.bf16.mxu0 %v2178_v24  ;;  %v1425_v10 = vadd.f32 1.0, %v2237_v1  ;;  %v1439_v61 = vmul.f32 %v1431_v5, %v2867_v27 }
 0x66f   :  { %2051 = vmatprep.mubr.msk.f32.mxu0 %vm163_vm0, %v1135_v0  ;;  %v1440_v14 = vmul.f32 %v1432_v12, %v2870_v29 }
 0x670   :  { %v2239_v58 = vpop.eup %2238  ;;  %v1433_v13 = vmul.f32 0.5, %v1425_v10 }
 0x671   :  { %v1136_v42 = vmul.f32 %v2239_v58, %v2852_v63  ;;  %2181 = vmatpush3.bf16.msra.mxu0 %v2178_v24 }
 0x672   :  { %v1441_v15 = vmul.f32 %v1433_v13, %v2876_v32 }
 0x673   :  { %2052 = vmatmul.mubr.msk.f32.gmra.mrb[18].mxu0 %vm163_vm0, %v1136_v42 }
 0x674   :  { %2082 = vmatprep.mubr.msk.f32.mxu0 %vm163_vm0, %v1438_v11 }
 0x677   :  { %2083 = vmatmul.mubr.msk.f32.vlgmr.msra.gmra.mrb[20].mxu0 %vm163_vm0, %v1439_v61 }
 0x678   :  { %2085 = vmatprep.mubr.msk.f32.mxu0 %vm163_vm0, %v1440_v14 }
 0x67b   :  { %2086 = vmatmul.mubr.msk.f32.gmra.mrb[22].mxu0 %vm163_vm0, %v1441_v15 }
 0x73f   :  { %v2903_v63 = vpop.f32.mrb[16].mxu0 }
 0x740   :  { %v2905_v16 = vpop.f32.mrb[17].mxu0 }
 0x741   :  { %2068 = vmatprep.mubr.msk.f32.mxu1 %vm163_vm0, %v2905_v16 }
 0x742   :  { %2069 = vmatmul.mubr.msk.f32.gmra.mrb[20].mxu1 %vm163_vm0, %v2903_v63 }
 0x746   :  { %v2911_v17 = vpop.f32.mrb[18].mxu0 }
 0x747   :  { %v2913_v21 = vpop.f32.mrb[19].mxu0 }
 0x748   :  { %2071 = vmatprep.mubr.msk.f32.mxu1 %vm163_vm0, %v2913_v21 }
 0x749   :  { %2072 = vmatmul.mubr.msk.f32.gmra.mrb[22].mxu1 %vm163_vm0, %v2911_v17 }
 0x74a   :  { %v2084_v23 = vpop.f32.mrb[20].mxu0 }
 0x74b   :  { %v1553_v24 = vadd.f32 %v2084_v23, %v2920_v22  ;;  %v1547_v26 = vpop.f32.mrb[21].mxu0 }
 0x74c   :  { %v1548_v27 = vadd.f32 %v2920_v22, %v1547_v26 }
 0x74d   :  { %v2927_v28 = vadd.f32 %v2779_v9, %v1553_v24 }
 0x74e   :  { %v2087_v29 = vpop.f32.mrb[22].mxu0  ;;  %v2930_v30 = vadd.f32 %v1548_v27, %v2781_v6 }
 0x74f   :  { %v1563_v31 = vadd.f32 %v2087_v29, %v2920_v22  ;;  %v1557_v32 = vpop.f32.mrb[23].mxu0  ;;  %v1597_v33 = vsel %vm163_vm0, %v2927_v28, 0.0 }
 0x750   :  { %v1558_v34 = vadd.f32 %v2920_v22, %v1557_v32  ;;  %1598 = vadd.xlane.f32.xlu0 %v1597_v33  ;;  %v1594_v35 = vsel %vm163_vm0, %v2930_v30, 0.0 }
 0x751   :  { %1595 = vadd.xlane.f32.xlu1 %v1594_v35  ;;  %v2939_v9 = vadd.f32 %v2783_v7, %v1563_v31 }
 0x752   :  { %v2942_v36 = vadd.f32 %v1558_v34, %v2785_v8 }
 0x753   :  { %v1603_v6 = vsel %vm163_vm0, %v2939_v9, 0.0 }
 0x754   :  { %1604 = vadd.xlane.f32.xlu0 %v1603_v6  ;;  %v1600_v37 = vsel %vm163_vm0, %v2942_v36, 0.0 }
 0x755   :  { %1601 = vadd.xlane.f32.xlu1 %v1600_v37 }
 0x7dd   :  { %v1599_v24 = vpop.xlane.xlu0 %1598 }
 0x7de   :  { %v1596_v26 = vpop.xlane.xlu1 %1595  ;;  %v1620_v34 = vmul.f32 0.03125, %v1599_v24 }
 0x7df   :  { %v1619_v6 = vmul.f32 0.03125, %v1596_v26 }
 0x7e1   :  { %v1605_v37 = vpop.xlane.xlu0 %1604 }
 0x815   :  { %v2070_v38 = vpop.f32.mrb[20].mxu1 }
 0x816   :  { %v1361_v39 = vadd.f32 %v2070_v38, %v2862_v25  ;;  %v1355_v44 = vpop.f32.mrb[21].mxu1 }
 0x817   :  { %v1356_v45 = vadd.f32 %v2862_v25, %v1355_v44 }
 0x818   :  { %v1379_v40 = vmul.f32 %v1361_v39, %v1361_v39 }
 0x819   :  { %v1378_v7 = vmul.f32 %v1356_v45, %v1356_v45 }
 0x81a   :  { %v1387_v46 = vmul.f32 %v1379_v40, %v1361_v39  ;;  %v2963_v40 = vsub.f32 %v2927_v28, %v1620_v34 }
 0x81b   :  { %v1386_v49 = vmul.f32 %v1378_v7, %v1356_v45  ;;  %v1622_v7 = vmul.f32 0.03125, %v1605_v37 }
 0x81c   :  { %v1395_v8 = vmul.f32 0.044715, %v1387_v46  ;;  %v2073_v41 = vpop.f32.mrb[22].mxu1 }
 0x81d   :  { %v1394_v47 = vmul.f32 0.044715, %v1386_v49  ;;  %v1371_v43 = vadd.f32 %v2073_v41, %v2862_v25  ;;  %v1365_v48 = vpop.f32.mrb[23].mxu1  ;;  %v2967_v49 = vsub.f32 %v2930_v30, %v1619_v6 }
 0x81e   :  { %v1403_v50 = vadd.f32 %v1395_v8, %v1361_v39  ;;  %v1366_v51 = vadd.f32 %v2862_v25, %v1365_v48  ;;  %v1636_v48 = vmul.f32 %v2963_v40, %v2963_v40 }
 0x81f   :  { %v1402_v54 = vadd.f32 %v1394_v47, %v1356_v45  ;;  %v1381_v55 = vmul.f32 %v1371_v43, %v1371_v43 }
 0x820   :  { %v1411_v53 = vmul.f32 0.7978846, %v1403_v50  ;;  %v1380_v52 = vmul.f32 %v1366_v51, %v1366_v51 }
 0x821   :  { %v1410_v56 = vmul.f32 0.7978846, %v1402_v54  ;;  %v1389_v18 = vmul.f32 %v1381_v55, %v1371_v43 }
 0x822   :  { %2240 = vtanh.f32 %v1411_v53  ;;  %v1388_v57 = vmul.f32 %v1380_v52, %v1366_v51 }
 0x823   :  { %2242 = vtanh.f32 %v1410_v56  ;;  %v1397_v19 = vmul.f32 0.044715, %v1389_v18 }
 0x824   :  { %v1396_v20 = vmul.f32 0.044715, %v1388_v57 }
 0x825   :  { %v1405_v59 = vadd.f32 %v1397_v19, %v1371_v43 }
 0x826   :  { %v1404_v60 = vadd.f32 %v1396_v20, %v1366_v51 }
 0x827   :  { %v1413_v62 = vmul.f32 0.7978846, %v1405_v59 }
 0x828   :  { %v1412_v4 = vmul.f32 0.7978846, %v1404_v60 }
 0x829   :  { %2244 = vtanh.f32 %v1413_v62 }
 0x82a   :  { %2246 = vtanh.f32 %v1412_v4 }
 0x82c   :  { %v2241_v0 = vpop.eup %2240 }
 0x82d   :  { %v2243_v1 = vpop.eup %2242  ;;  %v1427_v25 = vadd.f32 1.0, %v2241_v0 }
 0x82e   :  { %v1426_v2 = vadd.f32 1.0, %v2243_v1 }
 0x82f   :  { %v1435_v3 = vmul.f32 0.5, %v1427_v25 }
 0x830   :  { %v1434_v58 = vmul.f32 0.5, %v1426_v2 }
 0x831   :  { %v1443_v10 = vmul.f32 %v1435_v3, %v1361_v39  ;;  %v1602_v39 = vpop.xlane.xlu1 %1601 }
 0x832   :  { %v1442_v5 = vmul.f32 %v1434_v58, %v1356_v45 }
 0x833   :  { %v2245_v42 = vpop.eup %2244 }
 0x834   :  { %v2247_v11 = vpop.eup %2246  ;;  %v1429_v12 = vadd.f32 1.0, %v2245_v42  ;;  %2088 = vmatprep.mubr.msk.f32.mxu0 %vm163_vm0, %v1442_v5 }
 0x835   :  { %2089 = vmatmul.mubr.msk.f32.gmra.mrb[24].mxu0 %vm163_vm0, %v1443_v10  ;;  %v1428_v61 = vadd.f32 1.0, %v2247_v11 }
 0x836   :  { %v1437_v13 = vmul.f32 0.5, %v1429_v12 }
 0x837   :  { %v1436_v14 = vmul.f32 0.5, %v1428_v61 }
 0x838   :  { %v1445_v23 = vmul.f32 %v1437_v13, %v1371_v43  ;;  %v2973_v43 = vsub.f32 %v2939_v9, %v1622_v7 }
 0x839   :  { %v1444_v15 = vmul.f32 %v1436_v14, %v1366_v51 }
 0x83b   :  { %2091 = vmatprep.mubr.msk.f32.mxu1 %vm163_vm0, %v1444_v15 }
 0x83c   :  { %2092 = vmatmul.mubr.msk.f32.vlgmr.msra.gmra.mrb[24].mxu1 %vm163_vm0, %v1445_v23 }
 0x908   :  { %v2090_v27 = vpop.f32.mrb[24].mxu0 }
 0x909   :  { %v1573_v29 = vadd.f32 %v2090_v27, %v2920_v22  ;;  %v1567_v31 = vpop.f32.mrb[25].mxu0 }
 0x90a   :  { %v1568_v32 = vadd.f32 %v2920_v22, %v1567_v31 }
 0x90b   :  { %v1591_v33 = vadd.f32 %v2903_v63, %v1573_v29 }
 0x90c   :  { %v1590_v35 = vadd.f32 %v1568_v32, %v2905_v16  ;;  %v1621_v16 = vmul.f32 0.03125, %v1602_v39 }
 0x90d   :  { %v1609_v38 = vsel %vm163_vm0, %v1591_v33, 0.0 }
 0x90e   :  { %1610 = vadd.xlane.f32.xlu0 %v1609_v38  ;;  %v1606_v44 = vsel %vm163_vm0, %v1590_v35, 0.0  ;;  %v2979_v50 = vsub.f32 %v2942_v36, %v1621_v16 }
 0x90f   :  { %1607 = vadd.xlane.f32.xlu1 %v1606_v44  ;;  %v2093_v45 = vpop.f32.mrb[24].mxu1 }
 0x910   :  { %v1583_v46 = vadd.f32 %v2093_v45, %v2920_v22  ;;  %v1577_v63 = vpop.f32.mrb[25].mxu1  ;;  %v1637_v51 = vmul.f32 %v2979_v50, %v2979_v50 }
 0x911   :  { %v1578_v8 = vadd.f32 %v2920_v22, %v1577_v63  ;;  %v1635_v22 = vmul.f32 %v2967_v49, %v2967_v49 }
 0x912   :  { %v1593_v41 = vadd.f32 %v2911_v17, %v1583_v46  ;;  %v1646_v17 = vsel %vm163_vm0, %v1636_v48, 0.0  ;;  %v1649_v54 = vsel %vm163_vm0, %v1637_v51, 0.0 }
 0x913   :  { %v1592_v47 = vadd.f32 %v1578_v8, %v2913_v21  ;;  %v1638_v21 = vmul.f32 %v2973_v43, %v2973_v43  ;;  %v1643_v9 = vsel %vm163_vm0, %v1635_v22, 0.0  ;;  %v1830_v8 = vld [vmem:[%s3054_s14] ss:$0 sm:$0xff]  ;;  %s2439_s14 = smov [#allocation13]  }
 0x914   :  { %v1615_v28 = vsel %vm163_vm0, %v1593_v41, 0.0 }
 0x915   :  { %1616 = vadd.xlane.f32.xlu0 %v1615_v28  ;;  %v1612_v30 = vsel %vm163_vm0, %v1592_v47, 0.0  ;;  %v1652_v36 = vsel %vm163_vm0, %v1638_v21, 0.0 }
 0x916   :  { %1613 = vadd.xlane.f32.xlu1 %v1612_v30 }
 0x919   :  { %1647 = vadd.xlane.f32.xlu0 %v1646_v17 }
 0x91a   :  { %1644 = vadd.xlane.f32.xlu1 %v1643_v9 }
 0x91d   :  { %1653 = vadd.xlane.f32.xlu0 %v1652_v36 }
 0x91e   :  { %1650 = vadd.xlane.f32.xlu1 %v1649_v54 }
 0x99b   :  { %v1611_v55 = vpop.xlane.xlu0 %1610 }
 0x99c   :  { %v1624_v53 = vmul.f32 0.03125, %v1611_v55  ;;  %v1608_v52 = vpop.xlane.xlu1 %1607 }
 0x99d   :  { %v1623_v56 = vmul.f32 0.03125, %v1608_v52 }
 0x99e   :  { %v1632_v18 = vsub.f32 %v1591_v33, %v1624_v53 }
 0x99f   :  { %v2992_v57 = vsub.f32 %v1590_v35, %v1623_v56 }
 0x9a0   :  { %v1640_v19 = vmul.f32 %v1632_v18, %v1632_v18 }
 0x9a1   :  { %v1639_v20 = vmul.f32 %v2992_v57, %v2992_v57 }
 0x9a2   :  { %v1617_v59 = vpop.xlane.xlu0 %1616  ;;  %v1658_v60 = vsel %vm163_vm0, %v1640_v19, 0.0 }
 0x9a3   :  { %v1626_v62 = vmul.f32 0.03125, %v1617_v59  ;;  %1659 = vadd.xlane.f32.xlu0 %v1658_v60  ;;  %v1614_v4 = vpop.xlane.xlu1 %1613  ;;  %v1655_v0 = vsel %vm163_vm0, %v1639_v20, 0.0 }
 0x9a4   :  { %v1625_v1 = vmul.f32 0.03125, %v1614_v4  ;;  %1656 = vadd.xlane.f32.xlu1 %v1655_v0 }
 0x9a5   :  { %v2998_v25 = vsub.f32 %v1593_v41, %v1626_v62 }
 0x9a6   :  { %v3000_v2 = vsub.f32 %v1592_v47, %v1625_v1  ;;  %v1648_v10 = vpop.xlane.xlu0 %1647 }
 0x9a7   :  { %v1642_v3 = vmul.f32 %v2998_v25, %v2998_v25  ;;  %v1645_v11 = vpop.xlane.xlu1 %1644  ;;  %v1668_v12 = vmul.f32 0.03125, %v1648_v10 }
 0x9a8   :  { %v1641_v58 = vmul.f32 %v3000_v2, %v3000_v2  ;;  %v1667_v61 = vmul.f32 0.03125, %v1645_v11 }
 0x9a9   :  { %v1664_v5 = vsel %vm163_vm0, %v1642_v3, 0.0  ;;  %v1676_v14 = vadd.f32 1e-12, %v1668_v12 }
 0x9aa   :  { %1665 = vadd.xlane.f32.xlu0 %v1664_v5  ;;  %v1661_v42 = vsel %vm163_vm0, %v1641_v58, 0.0  ;;  %v1654_v13 = vpop.xlane.xlu0 %1653  ;;  %v1675_v15 = vadd.f32 1e-12, %v1667_v61 }
 0x9ab   :  { %1662 = vadd.xlane.f32.xlu1 %v1661_v42  ;;  %v1670_v23 = vmul.f32 0.03125, %v1654_v13  ;;  %v1651_v24 = vpop.xlane.xlu1 %1650  ;;  %2248 = vrsqrt.f32 %v1676_v14 }
 0x9ac   :  { %v1669_v26 = vmul.f32 0.03125, %v1651_v24  ;;  %2250 = vrsqrt.f32 %v1675_v15 }
 0x9ad   :  { %v1678_v27 = vadd.f32 1e-12, %v1670_v23 }
 0x9ae   :  { %v1677_v34 = vadd.f32 1e-12, %v1669_v26 }
 0x9af   :  { %2252 = vrsqrt.f32 %v1678_v27 }
 0x9b5   :  { %v2249_v44 = vpop.eup %2248 }
 0x9b6   :  { %v2251_v7 = vpop.eup %2250  ;;  %v1692_v16 = vmul.f32 %v2249_v44, %v2963_v40  ;;  %v1831_v40 = vld [vmem:[%s3055_s15] ss:$0 sm:$0xff]  ;;  %s1746_s15 = sshll.u32 %s2439_s14, 4  ;;  %s1747_s15 = int_to_ptr.vmem [resolvable:$true] %s1746_s15 }
 0x9b7   :  { %v1691_v41 = vmul.f32 %v2251_v7, %v2967_v49  ;;  %s2396_s4 = scalar_lea.vmem %s1747_s15, 512  ;;  %p2401_p7 = scmp.lt.s32.totalorder %s1747_s15, %s1747_s15 }
 0x9b8   :  { %v1707_v30 = vmul.f32 %v1830_v8, %v1692_v16  ;;  %p2397_p6 = scmp.ne.s32.totalorder %s1747_s15, %s2396_s4  ;;  %p2402_p8 = scmp.lt.s32.totalorder %s2396_s4, %s2396_s4 }
 0x9b9   :  { %v2253_v47 = vpop.eup %2252  ;;  %v1706_v21 = vmul.f32 %v1830_v8, %v1691_v41 }
 0x9ba   :  { %v1694_v36 = vmul.f32 %v2253_v47, %v2973_v43  ;;  %v1722_v55 = vadd.f32 %v1831_v40, %v1707_v30  ;;  %p2403_p9 = por %p2402_p8, %p2401_p7 }
 0x9bb   :  { %v1721_v52 = vadd.f32 %v1831_v40, %v1706_v21 }
 0x9bc   :  { %v1709_v59 = vmul.f32 %v1830_v8, %v1694_v36  ;;  %p2404_p10 = pnand %p2403_p9, %p2397_p6 }
 0xa30   :  { %v1660_v29 = vpop.xlane.xlu0 %1659 }
 0xa31   :  { %v1672_v31 = vmul.f32 0.03125, %v1660_v29  ;;  %v1657_v32 = vpop.xlane.xlu1 %1656 }
 0xa32   :  { %v1671_v33 = vmul.f32 0.03125, %v1657_v32 }
 0xa33   :  { %v1680_v35 = vadd.f32 1e-12, %v1672_v31 }
 0xa34   :  { %v1679_v6 = vadd.f32 1e-12, %v1671_v33 }
 0xa35   :  { %2254 = vrsqrt.f32 %v1680_v35 }
 0xa36   :  { %2256 = vrsqrt.f32 %v1679_v6 }
 0xa37   :  { %2258 = vrsqrt.f32 %v1677_v34  ;;  %v1666_v37 = vpop.xlane.xlu0 %1665 }
 0xa38   :  { %v1674_v38 = vmul.f32 0.03125, %v1666_v37  ;;  %v1663_v39 = vpop.xlane.xlu1 %1662 }
 0xa39   :  { %v1673_v45 = vmul.f32 0.03125, %v1663_v39 }
 0xa3a   :  { %v1682_v46 = vadd.f32 1e-12, %v1674_v38 }
 0xa3b   :  { %v1681_v63 = vadd.f32 1e-12, %v1673_v45 }
 0xa3c   :  { %2260 = vrsqrt.f32 %v1682_v46 }
 0xa3d   :  { %2262 = vrsqrt.f32 %v1681_v63 }
 0xa3f   :  { %v2255_v28 = vpop.eup %2254 }
 0xa40   :  { %v2257_v48 = vpop.eup %2256  ;;  %v1696_v22 = vmul.f32 %v2255_v28, %v1632_v18 }
 0xa41   :  { %v2259_v17 = vpop.eup %2258  ;;  %v1695_v9 = vmul.f32 %v2257_v48, %v2992_v57 }
 0xa42   :  { %v1711_v51 = vmul.f32 %v1830_v8, %v1696_v22  ;;  %v1693_v49 = vmul.f32 %v2259_v17, %v2979_v50  ;;  %v1724_v50 = vadd.f32 %v1831_v40, %v1709_v59 }
 0xa43   :  { %v1710_v54 = vmul.f32 %v1830_v8, %v1695_v9 }
 0xa44   :  { %v1726_v53 = vadd.f32 %v1831_v40, %v1711_v51  ;;  %v1708_v62 = vmul.f32 %v1830_v8, %v1693_v49 }
 0xa45   :  { %v1725_v56 = vadd.f32 %v1831_v40, %v1710_v54 }
 0xa46   :  { %v2261_v19 = vpop.eup %2260  ;;  %v1730_v18 = vadd.f32 %v1726_v53, %v1722_v55  ;;  %v1723_v5 = vadd.f32 %v1831_v40, %v1708_v62 }
 0xa47   :  { %v2263_v20 = vpop.eup %2262  ;;  %v1698_v57 = vmul.f32 %v2261_v19, %v2998_v25  ;;  %v1729_v60 = vadd.f32 %v1725_v56, %v1721_v52 }
 0xa48   :  { %v1697_v4 = vmul.f32 %v2263_v20, %v3000_v2  ;;  %v1734_v0 = vmul.f32 0.5, %v1730_v18 }
 0xa49   :  { %v1713_v1 = vmul.f32 %v1830_v8, %v1698_v57  ;;  %v1733_v43 = vmul.f32 0.5, %v1729_v60 }
 0xa4a   :  { %v1712_v3 = vmul.f32 %v1830_v8, %v1697_v4  ;;  %1738 = vst.msk [vmem:[#allocation13 + $0x8] sm:$0xff] %vm163_vm0, %v1734_v0 }
 0xa4b   :  { %v1728_v58 = vadd.f32 %v1831_v40, %v1713_v1  ;;  %1737 = vst.msk [vmem:[#allocation13] sm:$0xff] %vm163_vm0, %v1733_v43 }
 0xa4c   :  { %v1727_v42 = vadd.f32 %v1831_v40, %v1712_v3 }
 0xa4d   :  { %v1732_v10 = vadd.f32 %v1728_v58, %v1724_v50 }
 0xa4e   :  { %v1731_v25 = vadd.f32 %v1727_v42, %v1723_v5 }
 0xa4f   :  { %v1736_v11 = vmul.f32 0.5, %v1732_v10 }
 0xa50   :  { %v1735_v12 = vmul.f32 0.5, %v1731_v25 }
 0xa51   :  { %1740 = vst.msk [vmem:[#allocation13 + $0x18] sm:$0xff] %vm163_vm0, %v1736_v11 }
 0xa52   :  { %1739 = vst.msk [vmem:[#allocation13 + $0x10] sm:$0xff] %vm163_vm0, %v1735_v12 }
 0xa53   :  { %2407 = shalt.err (!%p2404_p10)
}
 0xa54   :  { %s2408_s3 = scalar_lea.hbm %s3056_s16, 512 }
 0xa55   :  { %p2409_p11 = scmp.ne.s32.totalorder %s3056_s16, %s2408_s3  ;;  %p2412_p12 = scmp.lt.u32.totalorder %s2408_s3, %s3056_s16 }
 0xa57   :  { %p2414_p13 = pnand %p2412_p12, %p2409_p11 }
 0xa59   :  { %2417 = shalt.err (!%p2414_p13)
}
 0xa5a   :  { %1752 = dma.vmem_to_hbm [thread:$0]  %s1747_s15, 512, %s3056_s16, [#allocation4], %s3064_s2, %s3064_s2, %s3063_s24  }
 0xa5b   :  { %2426 = dma.done.wait [#allocation4], 512  }
 0xa5c   :  { %2427 = vsyncadd [#allocation4], 4294966784 }
 0xa5d   :  { %1756 = vsyncpa [#allocation3], 1 }
 0xa5e   :  { %1757 = vsyncpa [#allocation6], 1 }
 0xa5f   :  { %1758 = vsyncpa [#allocation9], 1 }
 0xa60   :  { %1759 = vsyncpa [#allocation12], 1 }
 0xa61   :  { %1760 = vsyncpa [#allocation4], 1 }

</bundles_post_ra>
